<compile_context>
chip_gen: v7x
topology: tpu7x:2x2x1
jax: 0.10.0
libtpu: 0.0.40
codegen_flags: <defaults>
</compile_context>

<pallas_src>
import jax
import jax.numpy as jnp
from jax import lax
from jax.experimental import pallas as pl
from jax.experimental.pallas import tpu as pltpu

# ---------------- model dims ----------------
NUM_CLASSES = 18
OUT_PAD = 128        # lane-dense padded logits width
DIN_DEMO = 7
DIN_IMU = 7
HID = 32
B = 2   # batch
T = 8   # sequence length

GATE_ORDER = (0, 1, 3, 2)   # PyTorch gate blocks [i, f, g, o] -> kernel layout [i, f, o, g]


def imu_lstm_kernel(imu_ref, mask_ref, demo_ref,
                    wih_ref, whh_ref, b_ref,
                    w1p_ref, w1d_ref, b1_ref,
                    w2_ref, b2_ref,
                    out_ref, xsel_ref):
    f32 = jnp.float32
    Bn, Tn = mask_ref.shape
    G = whh_ref.shape[1]          # 8H: gate layout [i | f | o | g], each 2H = [fwd | bwd]
    H2 = G // 4                   # 2H
    H = H2 // 2

    # ---- hoisted input projection + fwd/bwd time-select, one MXU call for all T steps ----
    # imu_ref rows are time-major [x(t) | x(T-1-t)] feature concats; wih is the matching
    # block weight (top Din rows feed only fwd gate lanes, bottom Din rows only bwd lanes),
    # so this single dot directly yields the per-step selected gate inputs.
    xsel_ref[...] = (jnp.dot(imu_ref[...], wih_ref[...], preferred_element_type=f32)
                     + b_ref[...])                                   # (T*B, 8H)

    mask = mask_ref[...]          # (B, T)
    whh = whh_ref[...]            # (2H, 8H) block-diagonal per gate (fwd rows / bwd rows)
    half_is_fwd = lax.broadcasted_iota(jnp.int32, (Bn, H2), 1) < H   # (B, 2H)

    h = jnp.zeros((Bn, H2), f32)      # [h_fwd | h_bwd]
    c = jnp.zeros((Bn, H2), f32)      # [c_fwd | c_bwd]
    acc = jnp.zeros((Bn, H2), f32)    # masked sum of hidden states

    # ---- fused bidirectional recurrence, fully unrolled (T is compile-time constant) ----
    for s in range(Tn):
        x_s = xsel_ref[s * Bn:(s + 1) * Bn, :]                       # (B, 8H) clean vld
        z = x_s + jnp.dot(h, whh, preferred_element_type=f32)        # (B, 8H)

        # sigmoid only over i/f/o lanes (6H), tanh only over g lanes (2H)
        sg = jax.nn.sigmoid(z[:, :3 * H2])
        i_g = sg[:, 0 * H2:1 * H2]
        f_g = sg[:, 1 * H2:2 * H2]
        o_g = sg[:, 2 * H2:3 * H2]
        g_g = jnp.tanh(z[:, 3 * H2:4 * H2])

        c = f_g * c + i_g * g_g
        h = o_g * jnp.tanh(c)

        tf = s                # forward direction time index
        tb = Tn - 1 - s       # backward direction time index
        m_s = jnp.where(half_is_fwd, mask[:, tf:tf + 1], mask[:, tb:tb + 1])   # (B, 2H)
        acc = acc + m_s * h

    # ---- masked mean pooling (exact divide; runs once, off the recurrence chain) ----
    lengths = jnp.maximum(jnp.sum(mask, axis=1, keepdims=True), 1e-6)    # (B, 1)
    pooled = acc / lengths                                               # (B, 2H) = [fwd|bwd]

    # ---- MLP: Linear(2H + Ddemo -> 2H) + ReLU + Linear(2H -> C, lane-padded to 128) ----
    h1 = (jnp.dot(pooled, w1p_ref[...], preferred_element_type=f32)
          + jnp.dot(demo_ref[...], w1d_ref[...], preferred_element_type=f32)
          + b1_ref[...])
    h1 = jnp.maximum(h1, 0.0)
    out = jnp.dot(h1, w2_ref[...], preferred_element_type=f32) + b2_ref[...]
    out_ref[...] = out.astype(out_ref.dtype)


def imu_lstm_forward(demo, imu, mask, params):
    """demo: (B, Ddemo), imu: (B, T, Din), mask: (B, T) -> logits (B, C)."""
    Bn, Tn, Din = imu.shape
    # tiny host-side transpose/concat (negligible); rows of imu_flat are time-major
    # [x(t) | x(T-1-t)] feature concats so the kernel needs no permutation matmul.
    imu_tm = jnp.transpose(imu, (1, 0, 2)).astype(jnp.float32)       # (T, B, Din)
    imu_cat = jnp.concatenate([imu_tm, imu_tm[::-1]], axis=-1)       # (T, B, 2*Din)
    imu_flat = imu_cat.reshape(Tn * Bn, 2 * Din)

    args = (imu_flat, mask.astype(jnp.float32), demo.astype(jnp.float32),
            params["wih"], params["whh"], params["b"],
            params["w1p"], params["w1d"], params["b1"],
            params["w2"], params["b2"])

    vmem = pl.BlockSpec(memory_space=pltpu.MemorySpace.VMEM)
    out_pad = pl.pallas_call(
        imu_lstm_kernel,
        out_shape=jax.ShapeDtypeStruct((Bn, OUT_PAD), jnp.float32),
        in_specs=[vmem] * len(args),
        out_specs=vmem,
        scratch_shapes=[pltpu.VMEM((Tn * Bn, 8 * HID), jnp.float32)],
    )(*args)
    return out_pad[:, :NUM_CLASSES]


# ---------------- deterministic PyTorch-shaped parameters ----------------
def init_torch_params(key):
    ks = jax.random.split(key, 12)
    s = 1.0 / jnp.sqrt(jnp.float32(HID))

    def u(k, shape):
        return jax.random.uniform(k, shape, jnp.float32, -s, s)

    return dict(
        # nn.LSTM params (gate order i, f, g, o), forward + reverse directions
        w_ih_f=u(ks[0], (4 * HID, DIN_IMU)), w_hh_f=u(ks[1], (4 * HID, HID)),
        b_ih_f=u(ks[2], (4 * HID,)),         b_hh_f=u(ks[3], (4 * HID,)),
        w_ih_b=u(ks[4], (4 * HID, DIN_IMU)), w_hh_b=u(ks[5], (4 * HID, HID)),
        b_ih_b=u(ks[6], (4 * HID,)),         b_hh_b=u(ks[7], (4 * HID,)),
        # MLP: Linear(2H + Ddemo, 2H), Linear(2H, C)
        w1=u(ks[8], (2 * HID, 2 * HID + DIN_DEMO)), b1=u(ks[9], (2 * HID,)),
        w2=u(ks[10], (NUM_CLASSES, 2 * HID)),       b2=u(ks[11], (NUM_CLASSES,)),
    )


# ---------------- host-side weight packing for the kernel ----------------
def prepare_kernel_params(raw):
    H = HID
    wih_f_t = raw["w_ih_f"].T       # (Din, 4H), gate columns [i, f, g, o]
    wih_b_t = raw["w_ih_b"].T
    whh_f_t = raw["w_hh_f"].T       # (H, 4H)
    whh_b_t = raw["w_hh_b"].T
    b_f = (raw["b_ih_f"] + raw["b_hh_f"])[None, :]   # (1, 4H)
    b_b = (raw["b_ih_b"] + raw["b_hh_b"])[None, :]

    def interleave(a, b):
        # columns -> [i_f i_b | f_f f_b | o_f o_b | g_f g_b], each H wide
        blocks = []
        for k in GATE_ORDER:
            blocks.append(a[:, k * H:(k + 1) * H])
            blocks.append(b[:, k * H:(k + 1) * H])
        return jnp.concatenate(blocks, axis=1)

    # Combined input-projection weight for the [fwd-time features | bwd-time features]
    # concatenated input: top Din rows feed only fwd gate lanes, bottom Din rows only bwd.
    zeros_in = jnp.zeros_like(wih_f_t)
    wih_top = interleave(wih_f_t, zeros_in)              # (Din, 8H)
    wih_bot = interleave(zeros_in, wih_b_t)              # (Din, 8H)
    wih = jnp.concatenate([wih_top, wih_bot], axis=0)    # (2*Din, 8H)
    b_cat = interleave(b_f, b_b)                         # (1, 8H)

    zero_h = jnp.zeros((H, H), jnp.float32)
    blocks = []
    for k in GATE_ORDER:
        blocks.append(jnp.concatenate([whh_f_t[:, k * H:(k + 1) * H], zero_h], axis=0))  # fwd
        blocks.append(jnp.concatenate([zero_h, whh_b_t[:, k * H:(k + 1) * H]], axis=0))  # bwd
    whh = jnp.concatenate(blocks, axis=1)                # (2H, 8H) block-diagonal per gate

    w1t = raw["w1"].T                                    # (2H + Ddemo, 2H)
    w2_pad = jnp.zeros((2 * H, OUT_PAD), jnp.float32).at[:, :NUM_CLASSES].set(raw["w2"].T)
    b2_pad = jnp.zeros((1, OUT_PAD), jnp.float32).at[:, :NUM_CLASSES].set(raw["b2"][None, :])
    return dict(
        wih=wih, whh=whh, b=b_cat,
        w1p=w1t[:2 * H], w1d=w1t[2 * H:], b1=raw["b1"][None, :],
        w2=w2_pad, b2=b2_pad,
    )


# ---------------- pure-JAX reference (PyTorch semantics, raw weights) ----------------
def ref_forward(demo, imu, mask, raw):
    Bn, Tn, _ = imu.shape
    H = HID

    def run_dir(w_ih, w_hh, b_ih, b_hh, reverse):
        wih, whh, b = w_ih.T, w_hh.T, (b_ih + b_hh)[None, :]
        h = jnp.zeros((Bn, H), jnp.float32)
        c = jnp.zeros((Bn, H), jnp.float32)
        outs = [None] * Tn
        idxs = range(Tn - 1, -1, -1) if reverse else range(Tn)
        for t in idxs:
            x = imu[:, t, :]
            z = x @ wih + h @ whh + b
            i = jax.nn.sigmoid(z[:, :H])
            f = jax.nn.sigmoid(z[:, H:2 * H])
            g = jnp.tanh(z[:, 2 * H:3 * H])
            o = jax.nn.sigmoid(z[:, 3 * H:])
            c = f * c + i * g
            h = o * jnp.tanh(c)
            outs[t] = h
        return jnp.stack(outs, axis=1)               # (B, T, H)

    out_f = run_dir(raw["w_ih_f"], raw["w_hh_f"], raw["b_ih_f"], raw["b_hh_f"], False)
    out_b = run_dir(raw["w_ih_b"], raw["w_hh_b"], raw["b_ih_b"], raw["b_hh_b"], True)
    lstm_out = jnp.concatenate([out_f, out_b], axis=-1)          # (B, T, 2H)
    m = mask[:, :, None].astype(jnp.float32)
    summed = jnp.sum(lstm_out * m, axis=1)
    lengths = jnp.maximum(jnp.sum(m, axis=1), 1e-6)
    pooled = summed / lengths
    x = jnp.concatenate([pooled, demo], axis=1)                  # (B, 2H + Ddemo)
    h1 = jnp.maximum(x @ raw["w1"].T + raw["b1"], 0.0)
    return h1 @ raw["w2"].T + raw["b2"]


if __name__ == "__main__":
    key = jax.random.PRNGKey(0)
    k_p, k_demo, k_imu = jax.random.split(key, 3)

    raw = init_torch_params(k_p)
    kparams = prepare_kernel_params(raw)

    demo = jax.random.normal(k_demo, (B, DIN_DEMO), jnp.float32)
    imu = jax.random.normal(k_imu, (B, T, DIN_IMU), jnp.float32)
    # variable-length mask: sample 0 full length, sample 1 length 5
    mask = jnp.array([[1.0] * T, [1.0] * 5 + [0.0] * (T - 5)], dtype=jnp.float32)

    logits = jax.block_until_ready(imu_lstm_forward(demo, imu, mask, kparams))
    ref = ref_forward(demo, imu, mask, raw)

    assert logits.shape == (B, NUM_CLASSES)
    # exact divide in pooling now -> only f32 accumulation-order differences remain
    assert jnp.allclose(logits, ref, atol=1e-4, rtol=1e-4), (logits, ref)
    print("KERNEL_OK")
</pallas_src>

<mosaic_0001>
module attributes {stable_mosaic.version = 11 : i64} {
  func.func @imu_lstm_kernel(%arg0: memref<16x14xf32, #tpu.memory_space<vmem>>, %arg1: memref<2x8xf32, #tpu.memory_space<vmem>>, %arg2: memref<2x7xf32, #tpu.memory_space<vmem>>, %arg3: memref<14x256xf32, #tpu.memory_space<vmem>>, %arg4: memref<64x256xf32, #tpu.memory_space<vmem>>, %arg5: memref<1x256xf32, #tpu.memory_space<vmem>>, %arg6: memref<64x64xf32, #tpu.memory_space<vmem>>, %arg7: memref<7x64xf32, #tpu.memory_space<vmem>>, %arg8: memref<1x64xf32, #tpu.memory_space<vmem>>, %arg9: memref<64x128xf32, #tpu.memory_space<vmem>>, %arg10: memref<1x128xf32, #tpu.memory_space<vmem>>, %arg11: memref<2x128xf32, #tpu.memory_space<vmem>>, %arg12: memref<16x256xf32, #tpu.memory_space<vmem>>) attributes {dimension_semantics = [], scalar_prefetch = 0 : i64, scratch_operands = 1 : i64, tpu.core_type = #tpu.core_type<tc>} {
    %c0 = arith.constant 0 : index
    %c0_0 = arith.constant 0 : index
    %0 = vector.load %arg0[%c0, %c0_0] : memref<16x14xf32, #tpu.memory_space<vmem>>, vector<16x14xf32>
    %c0_1 = arith.constant 0 : index
    %c0_2 = arith.constant 0 : index
    %1 = vector.load %arg3[%c0_1, %c0_2] : memref<14x256xf32, #tpu.memory_space<vmem>>, vector<14x256xf32>
    %cst = arith.constant dense<0.000000e+00> : vector<16x256xf32>
    %2 = tpu.matmul %0, %1, %cst {dimension_numbers = #tpu.dot_dimension_numbers<[1], [0], [0], [1], [0, 0, 1, 1], [], []>} : vector<16x14xf32>, vector<14x256xf32>, vector<16x256xf32> -> vector<16x256xf32>
    %c0_3 = arith.constant 0 : index
    %c0_4 = arith.constant 0 : index
    %3 = vector.load %arg5[%c0_3, %c0_4] : memref<1x256xf32, #tpu.memory_space<vmem>>, vector<1x256xf32>
    %4 = vector.broadcast %3 : vector<1x256xf32> to vector<16x256xf32>
    %5 = arith.addf %2, %4 : vector<16x256xf32>
    %c0_5 = arith.constant 0 : index
    %c0_6 = arith.constant 0 : index
    %6 = vector.load %arg12[%c0_5, %c0_6] : memref<16x256xf32, #tpu.memory_space<vmem>>, vector<16x256xf32>
    tpu.vector_store %arg12[%c0_5, %c0_6], %5 {strides = array<i32>} : memref<16x256xf32, #tpu.memory_space<vmem>>, vector<16x256xf32>,
    %c0_7 = arith.constant 0 : index
    %c0_8 = arith.constant 0 : index
    %7 = vector.load %arg1[%c0_7, %c0_8] : memref<2x8xf32, #tpu.memory_space<vmem>>, vector<2x8xf32>
    %c0_9 = arith.constant 0 : index
    %c0_10 = arith.constant 0 : index
    %8 = vector.load %arg4[%c0_9, %c0_10] : memref<64x256xf32, #tpu.memory_space<vmem>>, vector<64x256xf32>
    %9 = tpu.iota {dimensions = array<i32: 1>} : vector<2x64xi32>
    %c32_i32 = arith.constant 32 : i32
    %10 = vector.broadcast %c32_i32 : i32 to vector<2x64xi32>
    %11 = arith.cmpi slt, %9, %10 : vector<2x64xi32>
    %cst_11 = arith.constant 0.000000e+00 : f32
    %12 = vector.broadcast %cst_11 : f32 to vector<2x64xf32>
    %cst_12 = arith.constant 0.000000e+00 : f32
    %13 = vector.broadcast %cst_12 : f32 to vector<2x64xf32>
    %cst_13 = arith.constant 0.000000e+00 : f32
    %14 = vector.broadcast %cst_13 : f32 to vector<2x64xf32>
    %c0_14 = arith.constant 0 : index
    %c0_15 = arith.constant 0 : index
    %15 = vector.load %arg12[%c0_14, %c0_15] : memref<16x256xf32, #tpu.memory_space<vmem>>, vector<2x256xf32>
    %cst_16 = arith.constant dense<0.000000e+00> : vector<2x256xf32>
    %16 = tpu.matmul %12, %8, %cst_16 {dimension_numbers = #tpu.dot_dimension_numbers<[1], [0], [0], [1], [0, 0, 1, 1], [], []>} : vector<2x64xf32>, vector<64x256xf32>, vector<2x256xf32> -> vector<2x256xf32>
    %17 = arith.addf %15, %16 : vector<2x256xf32>
    %18 = vector.extract_strided_slice %17 {offsets = [0, 0], sizes = [2, 192], strides = [1, 1]} : vector<2x256xf32> to vector<2x192xf32>
    %19 = arith.negf %18 : vector<2x192xf32>
    %20 = math.exp %19 : vector<2x192xf32>
    %cst_17 = arith.constant 1.000000e+00 : f32
    %21 = vector.broadcast %cst_17 : f32 to vector<2x192xf32>
    %22 = arith.addf %21, %20 : vector<2x192xf32>
    %23 = arith.divf %21, %22 : vector<2x192xf32>
    %24 = vector.extract_strided_slice %23 {offsets = [0, 0], sizes = [2, 64], strides = [1, 1]} : vector<2x192xf32> to vector<2x64xf32>
    %25 = vector.extract_strided_slice %23 {offsets = [0, 64], sizes = [2, 64], strides = [1, 1]} : vector<2x192xf32> to vector<2x64xf32>
    %26 = vector.extract_strided_slice %23 {offsets = [0, 128], sizes = [2, 64], strides = [1, 1]} : vector<2x192xf32> to vector<2x64xf32>
    %27 = vector.extract_strided_slice %17 {offsets = [0, 192], sizes = [2, 64], strides = [1, 1]} : vector<2x256xf32> to vector<2x64xf32>
    %28 = math.tanh %27 : vector<2x64xf32>
    %29 = arith.mulf %25, %13 : vector<2x64xf32>
    %30 = arith.mulf %24, %28 : vector<2x64xf32>
    %31 = arith.addf %29, %30 : vector<2x64xf32>
    %32 = math.tanh %31 : vector<2x64xf32>
    %33 = arith.mulf %26, %32 : vector<2x64xf32>
    %34 = vector.extract_strided_slice %7 {offsets = [0, 0], sizes = [2, 1], strides = [1, 1]} : vector<2x8xf32> to vector<2x1xf32>
    %35 = vector.extract_strided_slice %7 {offsets = [0, 7], sizes = [2, 1], strides = [1, 1]} : vector<2x8xf32> to vector<2x1xf32>
    %36 = vector.shape_cast %34 : vector<2x1xf32> to vector<2x1xf32>
    %37 = vector.broadcast %36 : vector<2x1xf32> to vector<2x64xf32>
    %38 = vector.shape_cast %35 : vector<2x1xf32> to vector<2x1xf32>
    %39 = vector.broadcast %38 : vector<2x1xf32> to vector<2x64xf32>
    %40 = arith.select %11, %37, %39 : vector<2x64xi1>, vector<2x64xf32>
    %41 = arith.mulf %40, %33 : vector<2x64xf32>
    %42 = arith.addf %14, %41 : vector<2x64xf32>
    %c2 = arith.constant 2 : index
    %c0_18 = arith.constant 0 : index
    %43 = vector.load %arg12[%c2, %c0_18] : memref<16x256xf32, #tpu.memory_space<vmem>>, vector<2x256xf32>
    %cst_19 = arith.constant dense<0.000000e+00> : vector<2x256xf32>
    %44 = tpu.matmul %33, %8, %cst_19 {dimension_numbers = #tpu.dot_dimension_numbers<[1], [0], [0], [1], [0, 0, 1, 1], [], []>} : vector<2x64xf32>, vector<64x256xf32>, vector<2x256xf32> -> vector<2x256xf32>
    %45 = arith.addf %43, %44 : vector<2x256xf32>
    %46 = vector.extract_strided_slice %45 {offsets = [0, 0], sizes = [2, 192], strides = [1, 1]} : vector<2x256xf32> to vector<2x192xf32>
    %47 = arith.negf %46 : vector<2x192xf32>
    %48 = math.exp %47 : vector<2x192xf32>
    %cst_20 = arith.constant 1.000000e+00 : f32
    %49 = vector.broadcast %cst_20 : f32 to vector<2x192xf32>
    %50 = arith.addf %49, %48 : vector<2x192xf32>
    %51 = arith.divf %49, %50 : vector<2x192xf32>
    %52 = vector.extract_strided_slice %51 {offsets = [0, 0], sizes = [2, 64], strides = [1, 1]} : vector<2x192xf32> to vector<2x64xf32>
    %53 = vector.extract_strided_slice %51 {offsets = [0, 64], sizes = [2, 64], strides = [1, 1]} : vector<2x192xf32> to vector<2x64xf32>
    %54 = vector.extract_strided_slice %51 {offsets = [0, 128], sizes = [2, 64], strides = [1, 1]} : vector<2x192xf32> to vector<2x64xf32>
    %55 = vector.extract_strided_slice %45 {offsets = [0, 192], sizes = [2, 64], strides = [1, 1]} : vector<2x256xf32> to vector<2x64xf32>
    %56 = math.tanh %55 : vector<2x64xf32>
    %57 = arith.mulf %53, %31 : vector<2x64xf32>
    %58 = arith.mulf %52, %56 : vector<2x64xf32>
    %59 = arith.addf %57, %58 : vector<2x64xf32>
    %60 = math.tanh %59 : vector<2x64xf32>
    %61 = arith.mulf %54, %60 : vector<2x64xf32>
    %62 = vector.extract_strided_slice %7 {offsets = [0, 1], sizes = [2, 1], strides = [1, 1]} : vector<2x8xf32> to vector<2x1xf32>
    %63 = vector.extract_strided_slice %7 {offsets = [0, 6], sizes = [2, 1], strides = [1, 1]} : vector<2x8xf32> to vector<2x1xf32>
    %64 = vector.shape_cast %62 : vector<2x1xf32> to vector<2x1xf32>
    %65 = vector.broadcast %64 : vector<2x1xf32> to vector<2x64xf32>
    %66 = vector.shape_cast %63 : vector<2x1xf32> to vector<2x1xf32>
    %67 = vector.broadcast %66 : vector<2x1xf32> to vector<2x64xf32>
    %68 = arith.select %11, %65, %67 : vector<2x64xi1>, vector<2x64xf32>
    %69 = arith.mulf %68, %61 : vector<2x64xf32>
    %70 = arith.addf %42, %69 : vector<2x64xf32>
    %c4 = arith.constant 4 : index
    %c0_21 = arith.constant 0 : index
    %71 = vector.load %arg12[%c4, %c0_21] : memref<16x256xf32, #tpu.memory_space<vmem>>, vector<2x256xf32>
    %cst_22 = arith.constant dense<0.000000e+00> : vector<2x256xf32>
    %72 = tpu.matmul %61, %8, %cst_22 {dimension_numbers = #tpu.dot_dimension_numbers<[1], [0], [0], [1], [0, 0, 1, 1], [], []>} : vector<2x64xf32>, vector<64x256xf32>, vector<2x256xf32> -> vector<2x256xf32>
    %73 = arith.addf %71, %72 : vector<2x256xf32>
    %74 = vector.extract_strided_slice %73 {offsets = [0, 0], sizes = [2, 192], strides = [1, 1]} : vector<2x256xf32> to vector<2x192xf32>
    %75 = arith.negf %74 : vector<2x192xf32>
    %76 = math.exp %75 : vector<2x192xf32>
    %cst_23 = arith.constant 1.000000e+00 : f32
    %77 = vector.broadcast %cst_23 : f32 to vector<2x192xf32>
    %78 = arith.addf %77, %76 : vector<2x192xf32>
    %79 = arith.divf %77, %78 : vector<2x192xf32>
    %80 = vector.extract_strided_slice %79 {offsets = [0, 0], sizes = [2, 64], strides = [1, 1]} : vector<2x192xf32> to vector<2x64xf32>
    %81 = vector.extract_strided_slice %79 {offsets = [0, 64], sizes = [2, 64], strides = [1, 1]} : vector<2x192xf32> to vector<2x64xf32>
    %82 = vector.extract_strided_slice %79 {offsets = [0, 128], sizes = [2, 64], strides = [1, 1]} : vector<2x192xf32> to vector<2x64xf32>
    %83 = vector.extract_strided_slice %73 {offsets = [0, 192], sizes = [2, 64], strides = [1, 1]} : vector<2x256xf32> to vector<2x64xf32>
    %84 = math.tanh %83 : vector<2x64xf32>
    %85 = arith.mulf %81, %59 : vector<2x64xf32>
    %86 = arith.mulf %80, %84 : vector<2x64xf32>
    %87 = arith.addf %85, %86 : vector<2x64xf32>
    %88 = math.tanh %87 : vector<2x64xf32>
    %89 = arith.mulf %82, %88 : vector<2x64xf32>
    %90 = vector.extract_strided_slice %7 {offsets = [0, 2], sizes = [2, 1], strides = [1, 1]} : vector<2x8xf32> to vector<2x1xf32>
    %91 = vector.extract_strided_slice %7 {offsets = [0, 5], sizes = [2, 1], strides = [1, 1]} : vector<2x8xf32> to vector<2x1xf32>
    %92 = vector.shape_cast %90 : vector<2x1xf32> to vector<2x1xf32>
    %93 = vector.broadcast %92 : vector<2x1xf32> to vector<2x64xf32>
    %94 = vector.shape_cast %91 : vector<2x1xf32> to vector<2x1xf32>
    %95 = vector.broadcast %94 : vector<2x1xf32> to vector<2x64xf32>
    %96 = arith.select %11, %93, %95 : vector<2x64xi1>, vector<2x64xf32>
    %97 = arith.mulf %96, %89 : vector<2x64xf32>
    %98 = arith.addf %70, %97 : vector<2x64xf32>
    %c6 = arith.constant 6 : index
    %c0_24 = arith.constant 0 : index
    %99 = vector.load %arg12[%c6, %c0_24] : memref<16x256xf32, #tpu.memory_space<vmem>>, vector<2x256xf32>
    %cst_25 = arith.constant dense<0.000000e+00> : vector<2x256xf32>
    %100 = tpu.matmul %89, %8, %cst_25 {dimension_numbers = #tpu.dot_dimension_numbers<[1], [0], [0], [1], [0, 0, 1, 1], [], []>} : vector<2x64xf32>, vector<64x256xf32>, vector<2x256xf32> -> vector<2x256xf32>
    %101 = arith.addf %99, %100 : vector<2x256xf32>
    %102 = vector.extract_strided_slice %101 {offsets = [0, 0], sizes = [2, 192], strides = [1, 1]} : vector<2x256xf32> to vector<2x192xf32>
    %103 = arith.negf %102 : vector<2x192xf32>
    %104 = math.exp %103 : vector<2x192xf32>
    %cst_26 = arith.constant 1.000000e+00 : f32
    %105 = vector.broadcast %cst_26 : f32 to vector<2x192xf32>
    %106 = arith.addf %105, %104 : vector<2x192xf32>
    %107 = arith.divf %105, %106 : vector<2x192xf32>
    %108 = vector.extract_strided_slice %107 {offsets = [0, 0], sizes = [2, 64], strides = [1, 1]} : vector<2x192xf32> to vector<2x64xf32>
    %109 = vector.extract_strided_slice %107 {offsets = [0, 64], sizes = [2, 64], strides = [1, 1]} : vector<2x192xf32> to vector<2x64xf32>
    %110 = vector.extract_strided_slice %107 {offsets = [0, 128], sizes = [2, 64], strides = [1, 1]} : vector<2x192xf32> to vector<2x64xf32>
    %111 = vector.extract_strided_slice %101 {offsets = [0, 192], sizes = [2, 64], strides = [1, 1]} : vector<2x256xf32> to vector<2x64xf32>
    %112 = math.tanh %111 : vector<2x64xf32>
    %113 = arith.mulf %109, %87 : vector<2x64xf32>
    %114 = arith.mulf %108, %112 : vector<2x64xf32>
    %115 = arith.addf %113, %114 : vector<2x64xf32>
    %116 = math.tanh %115 : vector<2x64xf32>
    %117 = arith.mulf %110, %116 : vector<2x64xf32>
    %118 = vector.extract_strided_slice %7 {offsets = [0, 3], sizes = [2, 1], strides = [1, 1]} : vector<2x8xf32> to vector<2x1xf32>
    %119 = vector.extract_strided_slice %7 {offsets = [0, 4], sizes = [2, 1], strides = [1, 1]} : vector<2x8xf32> to vector<2x1xf32>
    %120 = vector.shape_cast %118 : vector<2x1xf32> to vector<2x1xf32>
    %121 = vector.broadcast %120 : vector<2x1xf32> to vector<2x64xf32>
    %122 = vector.shape_cast %119 : vector<2x1xf32> to vector<2x1xf32>
    %123 = vector.broadcast %122 : vector<2x1xf32> to vector<2x64xf32>
    %124 = arith.select %11, %121, %123 : vector<2x64xi1>, vector<2x64xf32>
    %125 = arith.mulf %124, %117 : vector<2x64xf32>
    %126 = arith.addf %98, %125 : vector<2x64xf32>
    %c8 = arith.constant 8 : index
    %c0_27 = arith.constant 0 : index
    %127 = vector.load %arg12[%c8, %c0_27] : memref<16x256xf32, #tpu.memory_space<vmem>>, vector<2x256xf32>
    %cst_28 = arith.constant dense<0.000000e+00> : vector<2x256xf32>
    %128 = tpu.matmul %117, %8, %cst_28 {dimension_numbers = #tpu.dot_dimension_numbers<[1], [0], [0], [1], [0, 0, 1, 1], [], []>} : vector<2x64xf32>, vector<64x256xf32>, vector<2x256xf32> -> vector<2x256xf32>
    %129 = arith.addf %127, %128 : vector<2x256xf32>
    %130 = vector.extract_strided_slice %129 {offsets = [0, 0], sizes = [2, 192], strides = [1, 1]} : vector<2x256xf32> to vector<2x192xf32>
    %131 = arith.negf %130 : vector<2x192xf32>
    %132 = math.exp %131 : vector<2x192xf32>
    %cst_29 = arith.constant 1.000000e+00 : f32
    %133 = vector.broadcast %cst_29 : f32 to vector<2x192xf32>
    %134 = arith.addf %133, %132 : vector<2x192xf32>
    %135 = arith.divf %133, %134 : vector<2x192xf32>
    %136 = vector.extract_strided_slice %135 {offsets = [0, 0], sizes = [2, 64], strides = [1, 1]} : vector<2x192xf32> to vector<2x64xf32>
    %137 = vector.extract_strided_slice %135 {offsets = [0, 64], sizes = [2, 64], strides = [1, 1]} : vector<2x192xf32> to vector<2x64xf32>
    %138 = vector.extract_strided_slice %135 {offsets = [0, 128], sizes = [2, 64], strides = [1, 1]} : vector<2x192xf32> to vector<2x64xf32>
    %139 = vector.extract_strided_slice %129 {offsets = [0, 192], sizes = [2, 64], strides = [1, 1]} : vector<2x256xf32> to vector<2x64xf32>
    %140 = math.tanh %139 : vector<2x64xf32>
    %141 = arith.mulf %137, %115 : vector<2x64xf32>
    %142 = arith.mulf %136, %140 : vector<2x64xf32>
    %143 = arith.addf %141, %142 : vector<2x64xf32>
    %144 = math.tanh %143 : vector<2x64xf32>
    %145 = arith.mulf %138, %144 : vector<2x64xf32>
    %146 = vector.extract_strided_slice %7 {offsets = [0, 4], sizes = [2, 1], strides = [1, 1]} : vector<2x8xf32> to vector<2x1xf32>
    %147 = vector.extract_strided_slice %7 {offsets = [0, 3], sizes = [2, 1], strides = [1, 1]} : vector<2x8xf32> to vector<2x1xf32>
    %148 = vector.shape_cast %146 : vector<2x1xf32> to vector<2x1xf32>
    %149 = vector.broadcast %148 : vector<2x1xf32> to vector<2x64xf32>
    %150 = vector.shape_cast %147 : vector<2x1xf32> to vector<2x1xf32>
    %151 = vector.broadcast %150 : vector<2x1xf32> to vector<2x64xf32>
    %152 = arith.select %11, %149, %151 : vector<2x64xi1>, vector<2x64xf32>
    %153 = arith.mulf %152, %145 : vector<2x64xf32>
    %154 = arith.addf %126, %153 : vector<2x64xf32>
    %c10 = arith.constant 10 : index
    %c0_30 = arith.constant 0 : index
    %155 = vector.load %arg12[%c10, %c0_30] : memref<16x256xf32, #tpu.memory_space<vmem>>, vector<2x256xf32>
    %cst_31 = arith.constant dense<0.000000e+00> : vector<2x256xf32>
    %156 = tpu.matmul %145, %8, %cst_31 {dimension_numbers = #tpu.dot_dimension_numbers<[1], [0], [0], [1], [0, 0, 1, 1], [], []>} : vector<2x64xf32>, vector<64x256xf32>, vector<2x256xf32> -> vector<2x256xf32>
    %157 = arith.addf %155, %156 : vector<2x256xf32>
    %158 = vector.extract_strided_slice %157 {offsets = [0, 0], sizes = [2, 192], strides = [1, 1]} : vector<2x256xf32> to vector<2x192xf32>
    %159 = arith.negf %158 : vector<2x192xf32>
    %160 = math.exp %159 : vector<2x192xf32>
    %cst_32 = arith.constant 1.000000e+00 : f32
    %161 = vector.broadcast %cst_32 : f32 to vector<2x192xf32>
    %162 = arith.addf %161, %160 : vector<2x192xf32>
    %163 = arith.divf %161, %162 : vector<2x192xf32>
    %164 = vector.extract_strided_slice %163 {offsets = [0, 0], sizes = [2, 64], strides = [1, 1]} : vector<2x192xf32> to vector<2x64xf32>
    %165 = vector.extract_strided_slice %163 {offsets = [0, 64], sizes = [2, 64], strides = [1, 1]} : vector<2x192xf32> to vector<2x64xf32>
    %166 = vector.extract_strided_slice %163 {offsets = [0, 128], sizes = [2, 64], strides = [1, 1]} : vector<2x192xf32> to vector<2x64xf32>
    %167 = vector.extract_strided_slice %157 {offsets = [0, 192], sizes = [2, 64], strides = [1, 1]} : vector<2x256xf32> to vector<2x64xf32>
    %168 = math.tanh %167 : vector<2x64xf32>
    %169 = arith.mulf %165, %143 : vector<2x64xf32>
    %170 = arith.mulf %164, %168 : vector<2x64xf32>
    %171 = arith.addf %169, %170 : vector<2x64xf32>
    %172 = math.tanh %171 : vector<2x64xf32>
    %173 = arith.mulf %166, %172 : vector<2x64xf32>
    %174 = vector.extract_strided_slice %7 {offsets = [0, 5], sizes = [2, 1], strides = [1, 1]} : vector<2x8xf32> to vector<2x1xf32>
    %175 = vector.extract_strided_slice %7 {offsets = [0, 2], sizes = [2, 1], strides = [1, 1]} : vector<2x8xf32> to vector<2x1xf32>
    %176 = vector.shape_cast %174 : vector<2x1xf32> to vector<2x1xf32>
    %177 = vector.broadcast %176 : vector<2x1xf32> to vector<2x64xf32>
    %178 = vector.shape_cast %175 : vector<2x1xf32> to vector<2x1xf32>
    %179 = vector.broadcast %178 : vector<2x1xf32> to vector<2x64xf32>
    %180 = arith.select %11, %177, %179 : vector<2x64xi1>, vector<2x64xf32>
    %181 = arith.mulf %180, %173 : vector<2x64xf32>
    %182 = arith.addf %154, %181 : vector<2x64xf32>
    %c12 = arith.constant 12 : index
    %c0_33 = arith.constant 0 : index
    %183 = vector.load %arg12[%c12, %c0_33] : memref<16x256xf32, #tpu.memory_space<vmem>>, vector<2x256xf32>
    %cst_34 = arith.constant dense<0.000000e+00> : vector<2x256xf32>
    %184 = tpu.matmul %173, %8, %cst_34 {dimension_numbers = #tpu.dot_dimension_numbers<[1], [0], [0], [1], [0, 0, 1, 1], [], []>} : vector<2x64xf32>, vector<64x256xf32>, vector<2x256xf32> -> vector<2x256xf32>
    %185 = arith.addf %183, %184 : vector<2x256xf32>
    %186 = vector.extract_strided_slice %185 {offsets = [0, 0], sizes = [2, 192], strides = [1, 1]} : vector<2x256xf32> to vector<2x192xf32>
    %187 = arith.negf %186 : vector<2x192xf32>
    %188 = math.exp %187 : vector<2x192xf32>
    %cst_35 = arith.constant 1.000000e+00 : f32
    %189 = vector.broadcast %cst_35 : f32 to vector<2x192xf32>
    %190 = arith.addf %189, %188 : vector<2x192xf32>
    %191 = arith.divf %189, %190 : vector<2x192xf32>
    %192 = vector.extract_strided_slice %191 {offsets = [0, 0], sizes = [2, 64], strides = [1, 1]} : vector<2x192xf32> to vector<2x64xf32>
    %193 = vector.extract_strided_slice %191 {offsets = [0, 64], sizes = [2, 64], strides = [1, 1]} : vector<2x192xf32> to vector<2x64xf32>
    %194 = vector.extract_strided_slice %191 {offsets = [0, 128], sizes = [2, 64], strides = [1, 1]} : vector<2x192xf32> to vector<2x64xf32>
    %195 = vector.extract_strided_slice %185 {offsets = [0, 192], sizes = [2, 64], strides = [1, 1]} : vector<2x256xf32> to vector<2x64xf32>
    %196 = math.tanh %195 : vector<2x64xf32>
    %197 = arith.mulf %193, %171 : vector<2x64xf32>
    %198 = arith.mulf %192, %196 : vector<2x64xf32>
    %199 = arith.addf %197, %198 : vector<2x64xf32>
    %200 = math.tanh %199 : vector<2x64xf32>
    %201 = arith.mulf %194, %200 : vector<2x64xf32>
    %202 = vector.extract_strided_slice %7 {offsets = [0, 6], sizes = [2, 1], strides = [1, 1]} : vector<2x8xf32> to vector<2x1xf32>
    %203 = vector.extract_strided_slice %7 {offsets = [0, 1], sizes = [2, 1], strides = [1, 1]} : vector<2x8xf32> to vector<2x1xf32>
    %204 = vector.shape_cast %202 : vector<2x1xf32> to vector<2x1xf32>
    %205 = vector.broadcast %204 : vector<2x1xf32> to vector<2x64xf32>
    %206 = vector.shape_cast %203 : vector<2x1xf32> to vector<2x1xf32>
    %207 = vector.broadcast %206 : vector<2x1xf32> to vector<2x64xf32>
    %208 = arith.select %11, %205, %207 : vector<2x64xi1>, vector<2x64xf32>
    %209 = arith.mulf %208, %201 : vector<2x64xf32>
    %210 = arith.addf %182, %209 : vector<2x64xf32>
    %c14 = arith.constant 14 : index
    %c0_36 = arith.constant 0 : index
    %211 = vector.load %arg12[%c14, %c0_36] : memref<16x256xf32, #tpu.memory_space<vmem>>, vector<2x256xf32>
    %cst_37 = arith.constant dense<0.000000e+00> : vector<2x256xf32>
    %212 = tpu.matmul %201, %8, %cst_37 {dimension_numbers = #tpu.dot_dimension_numbers<[1], [0], [0], [1], [0, 0, 1, 1], [], []>} : vector<2x64xf32>, vector<64x256xf32>, vector<2x256xf32> -> vector<2x256xf32>
    %213 = arith.addf %211, %212 : vector<2x256xf32>
    %214 = vector.extract_strided_slice %213 {offsets = [0, 0], sizes = [2, 192], strides = [1, 1]} : vector<2x256xf32> to vector<2x192xf32>
    %215 = arith.negf %214 : vector<2x192xf32>
    %216 = math.exp %215 : vector<2x192xf32>
    %cst_38 = arith.constant 1.000000e+00 : f32
    %217 = vector.broadcast %cst_38 : f32 to vector<2x192xf32>
    %218 = arith.addf %217, %216 : vector<2x192xf32>
    %219 = arith.divf %217, %218 : vector<2x192xf32>
    %220 = vector.extract_strided_slice %219 {offsets = [0, 0], sizes = [2, 64], strides = [1, 1]} : vector<2x192xf32> to vector<2x64xf32>
    %221 = vector.extract_strided_slice %219 {offsets = [0, 64], sizes = [2, 64], strides = [1, 1]} : vector<2x192xf32> to vector<2x64xf32>
    %222 = vector.extract_strided_slice %219 {offsets = [0, 128], sizes = [2, 64], strides = [1, 1]} : vector<2x192xf32> to vector<2x64xf32>
    %223 = vector.extract_strided_slice %213 {offsets = [0, 192], sizes = [2, 64], strides = [1, 1]} : vector<2x256xf32> to vector<2x64xf32>
    %224 = math.tanh %223 : vector<2x64xf32>
    %225 = arith.mulf %221, %199 : vector<2x64xf32>
    %226 = arith.mulf %220, %224 : vector<2x64xf32>
    %227 = arith.addf %225, %226 : vector<2x64xf32>
    %228 = math.tanh %227 : vector<2x64xf32>
    %229 = arith.mulf %222, %228 : vector<2x64xf32>
    %230 = vector.extract_strided_slice %7 {offsets = [0, 7], sizes = [2, 1], strides = [1, 1]} : vector<2x8xf32> to vector<2x1xf32>
    %231 = vector.extract_strided_slice %7 {offsets = [0, 0], sizes = [2, 1], strides = [1, 1]} : vector<2x8xf32> to vector<2x1xf32>
    %232 = vector.shape_cast %230 : vector<2x1xf32> to vector<2x1xf32>
    %233 = vector.broadcast %232 : vector<2x1xf32> to vector<2x64xf32>
    %234 = vector.shape_cast %231 : vector<2x1xf32> to vector<2x1xf32>
    %235 = vector.broadcast %234 : vector<2x1xf32> to vector<2x64xf32>
    %236 = arith.select %11, %233, %235 : vector<2x64xi1>, vector<2x64xf32>
    %237 = arith.mulf %236, %229 : vector<2x64xf32>
    %238 = arith.addf %210, %237 : vector<2x64xf32>
    %cst_39 = arith.constant dense<0.000000e+00> : vector<2xf32>
    %239 = vector.multi_reduction <add>, %7, %cst_39 [1] : vector<2x8xf32> to vector<2xf32>
    %240 = vector.shape_cast %239 : vector<2xf32> to vector<2x1xf32>
    %cst_40 = arith.constant 9.99999997E-7 : f32
    %241 = vector.broadcast %cst_40 : f32 to vector<2x1xf32>
    %242 = arith.maximumf %240, %241 : vector<2x1xf32>
    %243 = vector.broadcast %242 : vector<2x1xf32> to vector<2x64xf32>
    %244 = arith.divf %238, %243 : vector<2x64xf32>
    %c0_41 = arith.constant 0 : index
    %c0_42 = arith.constant 0 : index
    %245 = vector.load %arg6[%c0_41, %c0_42] : memref<64x64xf32, #tpu.memory_space<vmem>>, vector<64x64xf32>
    %cst_43 = arith.constant dense<0.000000e+00> : vector<2x64xf32>
    %246 = tpu.matmul %244, %245, %cst_43 {dimension_numbers = #tpu.dot_dimension_numbers<[1], [0], [0], [1], [0, 0, 1, 1], [], []>} : vector<2x64xf32>, vector<64x64xf32>, vector<2x64xf32> -> vector<2x64xf32>
    %c0_44 = arith.constant 0 : index
    %c0_45 = arith.constant 0 : index
    %247 = vector.load %arg2[%c0_44, %c0_45] : memref<2x7xf32, #tpu.memory_space<vmem>>, vector<2x7xf32>
    %c0_46 = arith.constant 0 : index
    %c0_47 = arith.constant 0 : index
    %248 = vector.load %arg7[%c0_46, %c0_47] : memref<7x64xf32, #tpu.memory_space<vmem>>, vector<7x64xf32>
    %cst_48 = arith.constant dense<0.000000e+00> : vector<2x64xf32>
    %249 = tpu.matmul %247, %248, %cst_48 {dimension_numbers = #tpu.dot_dimension_numbers<[1], [0], [0], [1], [0, 0, 1, 1], [], []>} : vector<2x7xf32>, vector<7x64xf32>, vector<2x64xf32> -> vector<2x64xf32>
    %250 = arith.addf %246, %249 : vector<2x64xf32>
    %c0_49 = arith.constant 0 : index
    %c0_50 = arith.constant 0 : index
    %251 = vector.load %arg8[%c0_49, %c0_50] : memref<1x64xf32, #tpu.memory_space<vmem>>, vector<1x64xf32>
    %252 = vector.broadcast %251 : vector<1x64xf32> to vector<2x64xf32>
    %253 = arith.addf %250, %252 : vector<2x64xf32>
    %cst_51 = arith.constant 0.000000e+00 : f32
    %254 = vector.broadcast %cst_51 : f32 to vector<2x64xf32>
    %255 = arith.maximumf %253, %254 : vector<2x64xf32>
    %c0_52 = arith.constant 0 : index
    %c0_53 = arith.constant 0 : index
    %256 = vector.load %arg9[%c0_52, %c0_53] : memref<64x128xf32, #tpu.memory_space<vmem>>, vector<64x128xf32>
    %cst_54 = arith.constant dense<0.000000e+00> : vector<2x128xf32>
    %257 = tpu.matmul %255, %256, %cst_54 {dimension_numbers = #tpu.dot_dimension_numbers<[1], [0], [0], [1], [0, 0, 1, 1], [], []>} : vector<2x64xf32>, vector<64x128xf32>, vector<2x128xf32> -> vector<2x128xf32>
    %c0_55 = arith.constant 0 : index
    %c0_56 = arith.constant 0 : index
    %258 = vector.load %arg10[%c0_55, %c0_56] : memref<1x128xf32, #tpu.memory_space<vmem>>, vector<1x128xf32>
    %259 = vector.broadcast %258 : vector<1x128xf32> to vector<2x128xf32>
    %260 = arith.addf %257, %259 : vector<2x128xf32>
    %c0_57 = arith.constant 0 : index
    %c0_58 = arith.constant 0 : index
    %261 = vector.load %arg11[%c0_57, %c0_58] : memref<2x128xf32, #tpu.memory_space<vmem>>, vector<2x128xf32>
    tpu.vector_store %arg11[%c0_57, %c0_58], %260 {strides = array<i32>} : memref<2x128xf32, #tpu.memory_space<vmem>>, vector<2x128xf32>,
    return
  }
}

</mosaic_0001>

<bundles_post_ra>
// kernel: tpu_custom_call.1
= control target key start
LH: loop header
LB: loop body
LE: loop exit
PB: predicated region body
PF: predicated region fallthrough
CT: control target
= control target key end

     0   :  { %16 = vsyncpa [#allocation4], 0  ;;  %s2433_s0 = inlined_call_operand.hbm [shape: f32[16,14], index: 0, kind: input, shape index: {}]   ;;  %s2434_s1 = inlined_call_operand.vmem [shape: f32[2,8], index: 1, kind: input, shape index: {}]   ;;  %s2435_s2 = inlined_call_operand.vmem [shape: f32[2,7], index: 2, kind: input, shape index: {}]   ;;  %s2436_s3 = inlined_call_operand.hbm [shape: f32[14,256], index: 3, kind: input, shape index: {}]   ;;  %s2437_s4 = inlined_call_operand.hbm [shape: f32[64,256], index: 4, kind: input, shape index: {}]   ;;  %s2438_s5 = inlined_call_operand.vmem [shape: f32[1,256], index: 5, kind: input, shape index: {}]   ;;  %s2439_s6 = inlined_call_operand.hbm [shape: f32[64,64], index: 6, kind: input, shape index: {}]   ;;  %s2440_s7 = inlined_call_operand.vmem [shape: f32[7,64], index: 7, kind: input, shape index: {}]   ;;  %s2441_s8 = inlined_call_operand.vmem [shape: f32[1,64], index: 8, kind: input, shape index: {}]   ;;  %s2442_s9 = inlined_call_operand.hbm [shape: f32[64,128], index: 9, kind: input, shape index: {}]   ;;  %s2443_s10 = inlined_call_operand.vmem [shape: f32[1,128], index: 10, kind: input, shape index: {}]   ;;  %s2444_s11 = inlined_call_operand.hbm [shape: f32[2,128], index: 11, kind: output, shape index: {}]  }
   0x1   :  { %17 = vsyncpa [#allocation7], 0 }
   0x2   :  { %18 = vsyncpa [#allocation10], 0 }
   0x3   :  { %19 = vsyncpa [#allocation5], 0  ;;  %s2038_s17 = smov [#allocation6]   ;;  %s1898_s21 = scalar_lea.hbm %s2436_s3, 512 }
   0x4   :  { %s41_s18 = sshll.u32 %s2038_s17, 4  ;;  %p1899_p0 = scmp.ne.s32.totalorder %s2436_s3, %s1898_s21  ;;  %s42_s18 = int_to_ptr.vmem [resolvable:$true] %s41_s18 }
   0x5   :  { %p1902_p1 = scmp.lt.u32.totalorder %s1898_s21, %s2436_s3 }
   0x7   :  { %p1904_p2 = pnand %p1902_p1, %p1899_p0 }
   0x9   :  { %1907 = shalt.err (!%p1904_p2)
}
   0xa   :  { %s1908_s26 = scalar_lea.vmem %s42_s18, 512  ;;  %p1913_p4 = scmp.lt.s32.totalorder %s42_s18, %s42_s18 }
   0xb   :  { %p1909_p3 = scmp.ne.s32.totalorder %s42_s18, %s1908_s26  ;;  %p1914_p5 = scmp.lt.s32.totalorder %s1908_s26, %s1908_s26 }
   0xd   :  { %p1915_p6 = por %p1914_p5, %p1913_p4 }
   0xf   :  { %p1916_p7 = pnand %p1915_p6, %p1909_p3 }
  0x11   :  { %1919 = shalt.err (!%p1916_p7)
}
  0x12   :  { %s2039_s27 = smov 256   ;;  %s2040_s28 = smov 16  }
  0x13   :  { %47 = dma.hbm_to_vmem [thread:$0]  %s2436_s3, 512, %s42_s18, [#allocation7], %s2039_s27, %s2039_s27, %s2040_s28  }
  0x14   :  { %s2041_s12 = smov [#allocation9]   ;;  %s2042_s14 = smov [#allocation3]  }
  0x15   :  { %s67_s13 = sshll.u32 %s2041_s12, 4  ;;  %s25_s15 = sshll.u32 %s2042_s14, 4  ;;  %s68_s13 = int_to_ptr.vmem [resolvable:$true] %s67_s13  ;;  %s26_s15 = int_to_ptr.vmem [resolvable:$true] %s25_s15 }
  0x16   :  { %s1920_s19 = scalar_lea.hbm %s2439_s6, 1024 }
  0x17   :  { %p1921_p8 = scmp.ne.s32.totalorder %s2439_s6, %s1920_s19  ;;  %p1924_p9 = scmp.lt.u32.totalorder %s1920_s19, %s2439_s6 }
  0x19   :  { %p1926_p10 = pnand %p1924_p9, %p1921_p8 }
  0x1b   :  { %1929 = shalt.err (!%p1926_p10)
}
  0x1c   :  { %s1930_s3 = scalar_lea.vmem %s68_s13, 1024  ;;  %p1935_p12 = scmp.lt.s32.totalorder %s68_s13, %s68_s13 }
  0x1d   :  { %p1931_p11 = scmp.ne.s32.totalorder %s68_s13, %s1930_s3  ;;  %p1936_p13 = scmp.lt.s32.totalorder %s1930_s3, %s1930_s3 }
  0x1f   :  { %p1937_p0 = por %p1936_p13, %p1935_p12 }
  0x21   :  { %p1938_p1 = pnand %p1937_p0, %p1931_p11 }
  0x23   :  { %1941 = shalt.err (!%p1938_p1)
}
  0x24   :  { %s2043_s18 = smov 128   ;;  %s2044_s24 = smov 8  }
  0x25   :  { %73 = dma.hbm_to_vmem [thread:$0]  %s2439_s6, 1024, %s68_s13, [#allocation10], %s2043_s18, %s2043_s18, %s2044_s24  }
  0x26   :  { %s1942_s12 = scalar_lea.hbm %s2433_s0, 256 }
  0x27   :  { %p1943_p2 = scmp.ne.s32.totalorder %s2433_s0, %s1942_s12  ;;  %p1946_p3 = scmp.lt.u32.totalorder %s1942_s12, %s2433_s0 }
  0x29   :  { %p1948_p4 = pnand %p1946_p3, %p1943_p2 }
  0x2b   :  { %1951 = shalt.err (!%p1948_p4)
}
  0x2c   :  { %s1952_s20 = scalar_lea.vmem %s26_s15, 256  ;;  %p1957_p6 = scmp.lt.s32.totalorder %s26_s15, %s26_s15 }
  0x2d   :  { %p1953_p5 = scmp.ne.s32.totalorder %s26_s15, %s1952_s20  ;;  %p1958_p7 = scmp.lt.s32.totalorder %s1952_s20, %s1952_s20 }
  0x2f   :  { %p1959_p8 = por %p1958_p7, %p1957_p6 }
  0x31   :  { %p1960_p9 = pnand %p1959_p8, %p1953_p5 }
  0x33   :  { %1963 = shalt.err (!%p1960_p9)
}
  0x34   :  { %31 = dma.hbm_to_vmem [thread:$0]  %s2433_s0, 256, %s26_s15, [#allocation4], %s2043_s18, %s2043_s18, %s2044_s24  }
  0x35   :  { %s2045_s21 = smov [#allocation8]   ;;  %s2046_s23 = smov [#allocation11]  }
  0x36   :  { %s53_s22 = sshll.u32 %s2045_s21, 4  ;;  %s83_s3 = sshll.u32 %s2046_s23, 4  ;;  %s54_s22 = int_to_ptr.vmem [resolvable:$true] %s53_s22  ;;  %s84_s3 = int_to_ptr.vmem [resolvable:$true] %s83_s3 }
  0x37   :  { %s1964_s29 = scalar_lea.hbm %s2437_s4, 2048 }
  0x38   :  { %p1965_p10 = scmp.ne.s32.totalorder %s2437_s4, %s1964_s29  ;;  %p1968_p11 = scmp.lt.u32.totalorder %s1964_s29, %s2437_s4 }
  0x3a   :  { %p1970_p12 = pnand %p1968_p11, %p1965_p10 }
  0x3c   :  { %1973 = shalt.err (!%p1970_p12)
}
  0x3d   :  { %s1974_s0 = scalar_lea.vmem %s54_s22, 2048  ;;  %p1979_p0 = scmp.lt.s32.totalorder %s54_s22, %s54_s22 }
  0x3e   :  { %p1975_p13 = scmp.ne.s32.totalorder %s54_s22, %s1974_s0  ;;  %p1980_p1 = scmp.lt.s32.totalorder %s1974_s0, %s1974_s0 }
  0x40   :  { %p1981_p2 = por %p1980_p1, %p1979_p0 }
  0x42   :  { %p1982_p3 = pnand %p1981_p2, %p1975_p13 }
  0x44   :  { %1985 = shalt.err (!%p1982_p3)
}
  0x45   :  { %59 = dma.hbm_to_vmem [thread:$0]  %s2437_s4, 2048, %s54_s22, [#allocation7], %s2039_s27, %s2039_s27, %s2040_s28  }
  0x46   :  { %s1986_s6 = scalar_lea.hbm %s2442_s9, 1024 }
  0x47   :  { %p1987_p4 = scmp.ne.s32.totalorder %s2442_s9, %s1986_s6  ;;  %p1990_p5 = scmp.lt.u32.totalorder %s1986_s6, %s2442_s9 }
  0x49   :  { %p1992_p6 = pnand %p1990_p5, %p1987_p4 }
  0x4b   :  { %1995 = shalt.err (!%p1992_p6)
}
  0x4c   :  { %s1996_s26 = scalar_lea.vmem %s84_s3, 1024  ;;  %p2001_p8 = scmp.lt.s32.totalorder %s84_s3, %s84_s3 }
  0x4d   :  { %p1997_p7 = scmp.ne.s32.totalorder %s84_s3, %s1996_s26  ;;  %p2002_p9 = scmp.lt.s32.totalorder %s1996_s26, %s1996_s26 }
  0x4f   :  { %p2003_p10 = por %p2002_p9, %p2001_p8 }
  0x51   :  { %p2004_p11 = pnand %p2003_p10, %p1997_p7 }
  0x53   :  { %2007 = shalt.err (!%p2004_p11)
}
  0x54   :  { %89 = dma.hbm_to_vmem [thread:$0]  %s2442_s9, 1024, %s84_s3, [#allocation10], %s2043_s18, %s2043_s18, %s2044_s24  }
  0x55   :  { %2030 = dma.done.wait [#allocation4], 256  }
  0x56   :  { %2031 = vsyncadd [#allocation4], 4294967040 }
  0x57   :  { %2032 = dma.done.wait [#allocation7], 2560  }
  0x58   :  { %2033 = vsyncadd [#allocation7], 4294964736 }
  0x59   :  { %2034 = dma.done.wait [#allocation10], 2048  }
  0x5a   :  { %2035 = vsyncadd [#allocation10], 4294965248  ;;  %v2047_v0 = vmov 0.0   ;;  %vm132_vm0 = vcmask 1045504   ;;  %vm2048_vm1 = vmmov 1   ;;  %v222_v2 = vld [vmem:[#allocation8 + $0x8] sm:$0xff]  ;;  %v115_v33 = vlaneseq }
  0x5b   :  { %203 = vmatprep.mubr.f32.mxu0 %v2047_v0  ;;  %310 = vmatprep.mubr.f32.mxu1 %v2047_v0  ;;  %vm2198_vm2 = vmpackc.low %vm132_vm0, %vm2048_vm1  ;;  %v224_v3 = vld [vmem:[#allocation8 + $0x18] sm:$0xff]  ;;  %v110_v4 = vld [vmem:[#allocation6 + $0x8] sm:$0xff]  ;;  %vm125_vm3 = vcmask 113664   ;;  %s2049_s18 = smov 64   ;;  %vm242_vm4 = vcmask 523264   ;;  %vm1232_vm5 = vcmask 58368  }
  0x5c   :  { %v2202_v5 = vpack.c.bf16 %v224_v3, %v222_v2  ;;  %v112_v6 = vld [vmem:[#allocation6 + $0x18] sm:$0x3f]  ;;  %v221_v7 = vld [vmem:[#allocation8] sm:$0xff]  ;;  %v223_v8 = vld [vmem:[#allocation8 + $0x10] sm:$0xff]  ;;  %v116_v34 = vshrl.u32 %v115_v33, 7  ;;  %vm1253_vm6 = vcmask 1046528  }
  0x5d   :  { %v1611_v9 = vpack.c.bf16 %v112_v6, %v110_v4  ;;  %v2204_v10 = vpack.c.bf16 %v223_v8, %v221_v7  ;;  %v109_v11 = vld [vmem:[#allocation6] sm:$0xff]  ;;  %v111_v12 = vld [vmem:[#allocation6 + $0x10] sm:$0x3f]  ;;  %v226_v13 = vld [vmem:[#allocation8 + $0x28] sm:$0xff]  ;;  %vm1249_vm7 = vcmask 56320   ;;  %vm2059_vm8 = vmmov 0  }
  0x5e   :  { %1618 = vmatprep.subr.bf16.mxu1 %v2202_v5  ;;  %v1614_v14 = vpack.c.bf16 %v111_v12, %v109_v11  ;;  %v228_v15 = vld [vmem:[#allocation8 + $0x38] sm:$0xff]  ;;  %v225_v16 = vld [vmem:[#allocation8 + $0x20] sm:$0xff]  ;;  %v227_v18 = vld [vmem:[#allocation8 + $0x30] sm:$0xff]  ;;  %v117_v35 = vsub.s32 0, %v116_v34  ;;  %v121_v37 = vsub.s32 1, %v116_v34  ;;  %s2060_s14 = smov [#allocation12]  }
  0x5f   :  { %1613 = vmatprep.subr.msk.bf16.mxu0 %vm2198_vm2, %v1611_v9  ;;  %1620 = vmatpush1.bf16.msra.mxu1 %v2204_v10  ;;  %v2210_v17 = vpack.c.bf16 %v228_v15, %v226_v13  ;;  %v230_v19 = vld [vmem:[#allocation8 + $0x48] sm:$0xff]  ;;  %v232_v20 = vld [vmem:[#allocation8 + $0x58] sm:$0xff]  ;;  %v107_v21 = vld [vmem:[#allocation3] sm:$0xff]  ;;  %v2214_v22 = vpack.c.bf16 %v227_v18, %v225_v16  ;;  %s1504_s16 = sshll.u32 %s2060_s14, 4  ;;  %s1505_s16 = int_to_ptr.vmem [resolvable:$true] %s1504_s16 }
  0x60   :  { %1616 = vmatpush1.bf16.msk.msra.mxu0 %vm2198_vm2, %v1614_v14  ;;  %v2216_v23 = vpack.c.bf16 %v232_v20, %v230_v19  ;;  %v229_v24 = vld [vmem:[#allocation8 + $0x40] sm:$0xff]  ;;  %v231_v25 = vld [vmem:[#allocation8 + $0x50] sm:$0xff]  ;;  %v234_v26 = vld [vmem:[#allocation8 + $0x68] sm:$0xff]  ;;  %s2008_s0 = scalar_lea.vmem %s1505_s16, 32  ;;  %p2013_p13 = scmp.lt.s32.totalorder %s1505_s16, %s1505_s16 }
  0x61   :  { %1622 = vmatprep.subr.bf16.mxu1 %v2210_v17  ;;  %v236_v27 = vld [vmem:[#allocation8 + $0x78] sm:$0xff]  ;;  %1634 = vmatprep.subr.bf16.mxu0 %v2202_v5  ;;  %v2222_v28 = vpack.c.bf16 %v231_v25, %v229_v24  ;;  %v233_v30 = vld [vmem:[#allocation8 + $0x60] sm:$0xff]  ;;  %v235_v31 = vld [vmem:[#allocation8 + $0x70] sm:$0xff]  ;;  %p2009_p12 = scmp.ne.s32.totalorder %s1505_s16, %s2008_s0  ;;  %p2014_p0 = scmp.lt.s32.totalorder %s2008_s0, %s2008_s0 }
  0x62   :  { %v2225_v29 = vpack.c.bf16 %v236_v27, %v234_v26  ;;  %v2231_v32 = vpack.c.bf16 %v235_v31, %v233_v30  ;;  %v113_v36 = vld [vmem:[%s2438_s5] sm:$0x3]  ;;  %v108_v57 = vld [vmem:[#allocation3 + $0x8] sm:$0xff] }
  0x63   :  { %1517 = vmatmul.mubr.msk.f32.vlgmr.msra.gmra.mrb[0].mxu0 %vm125_vm3, %v107_v21  ;;  %1624 = vmatpush1.bf16.msra.mxu1 %v2214_v22  ;;  %v118_v38 = vrot.slane %v113_v36, %v117_v35  ;;  %v122_v39 = vrot.slane %v113_v36, %v121_v37  ;;  %p2015_p1 = por %p2014_p0, %p2013_p13 }
  0x64   :  { %1626 = vmatprep.subr.bf16.mxu1 %v2216_v23  ;;  %1636 = vmatpush1.bf16.msra.mxu0 %v2204_v10 }
  0x65   :  { %1638 = vmatprep.subr.bf16.mxu0 %v2210_v17  ;;  %209 = vmatprep.mubr.f32.mxu0 %v2047_v0  ;;  %p2016_p2 = pnand %p2015_p1, %p2009_p12 }
  0x67   :  { %1628 = vmatpush1.bf16.msra.mxu1 %v2222_v28  ;;  %1518 = vmatmul.mubr.msk.f32.gmra.mrb[2].mxu0 %vm125_vm3, %v108_v57 }
  0x68   :  { %1630 = vmatprep.subr.bf16.mxu1 %v2225_v29  ;;  %1640 = vmatpush1.bf16.msra.mxu0 %v2214_v22 }
  0x69   :  { %1642 = vmatprep.subr.bf16.mxu0 %v2216_v23  ;;  %430 = vmatprep.mubr.f32.mxu0 %v2047_v0 }
  0x6b   :  { %1632 = vmatpush1.bf16.msra.mxu1 %v2231_v32 }
  0x6c   :  { %1644 = vmatpush1.bf16.msra.mxu0 %v2222_v28  ;;  %1650 = vmatprep.subr.bf16.mxu1 %v2202_v5 }
  0x6d   :  { %1646 = vmatprep.subr.bf16.mxu0 %v2225_v29 }
  0x6e   :  { %311 = vmatmul.mubr.f32.vlgmr.msra.gmra.mrb[0].mxu1 %v2047_v0 }
  0x6f   :  { %1652 = vmatpush1.bf16.msra.mxu1 %v2204_v10  ;;  %560 = vmatprep.mubr.f32.mxu1 %v2047_v0 }
  0x70   :  { %1648 = vmatpush1.bf16.msra.mxu0 %v2231_v32  ;;  %1654 = vmatprep.subr.bf16.mxu1 %v2210_v17 }
  0x71   :  { %1666 = vmatprep.subr.bf16.mxu0 %v2202_v5 }
  0x73   :  { %1656 = vmatpush1.bf16.msra.mxu1 %v2214_v22 }
  0x74   :  { %1658 = vmatprep.subr.bf16.mxu1 %v2216_v23 }
  0x77   :  { %1660 = vmatpush1.bf16.msra.mxu1 %v2222_v28 }
  0x78   :  { %1662 = vmatprep.subr.bf16.mxu1 %v2225_v29 }
  0x7b   :  { %1664 = vmatpush1.bf16.msra.mxu1 %v2231_v32 }
  0x7c   :  { %1682 = vmatprep.subr.bf16.mxu1 %v2202_v5 }
 0x136   :  { %v205_v40 = vpop.f32.mrb[0].mxu0 }
 0x137   :  { %v206_v41 = vadd.f32 %v205_v40, %v118_v38  ;;  %v207_v42 = vpop.f32.mrb[1].mxu0 }
 0x138   :  { %v208_v43 = vadd.f32 %v207_v42, %v122_v39 }
 0x139   :  { %216 = vst [vmem:[#allocation2] sm:$0xff] %v206_v41 }
 0x13a   :  { %217 = vst [vmem:[#allocation2 + $0x8] sm:$0xff] %v208_v43  ;;  %v211_v63 = vpop.f32.mrb[2].mxu0 }
 0x13b   :  { %v212_v1 = vadd.f32 %v211_v63, %v118_v38  ;;  %v213_v2 = vpop.f32.mrb[3].mxu0 }
 0x13c   :  { %v214_v3 = vadd.f32 %v213_v2, %v122_v39 }
 0x13d   :  { %218 = vst [vmem:[#allocation2 + $0x10] sm:$0xff] %v212_v1 }
 0x13e   :  { %219 = vst [vmem:[#allocation2 + $0x18] sm:$0xff] %v214_v3 }
 0x140   :  { %v240_v49 = vld [vmem:[#allocation2] sm:$0x3]  ;;  %v361_v19 = vld [vmem:[#allocation2] sm:$0xc] }
 0x141   :  { %v312_v44 = vpop.f32.mrb[0].mxu1  ;;  %v241_v45 = vld [vmem:[#allocation2 + $0x8] sm:$0x3]  ;;  %v362_v14 = vld [vmem:[#allocation2 + $0x8] sm:$0xc] }
 0x142   :  { %v314_v46 = vpop.f32.mrb[1].mxu1  ;;  %v317_v50 = vadd.f32 %v312_v44, %v240_v49 }
 0x143   :  { %v318_v47 = vadd.f32 %v314_v46, %v241_v45 }
 0x144   :  { %v1519_v51 = vmul.f32 -1.442695, %v317_v50 }
 0x145   :  { %1800 = vtanh.f32 %v318_v47  ;;  %v1520_v62 = vmul.f32 -1.442695, %v318_v47 }
 0x146   :  { %1802 = vpow2.f32 %v1519_v51 }
 0x14f   :  { %v1801_v48 = vpop.eup %1800 }
 0x150   :  { %334 = vrot.lane.b32.xlu0 %v1801_v48, %s2049_s18  ;;  %v1803_v52 = vpop.eup %1802  ;;  %v493_v48 = vld [vmem:[#allocation2 + $0x8] sm:$0x30] }
 0x151   :  { %v325_v53 = vadd.f32 1.0, %v1803_v52  ;;  %v492_v52 = vld [vmem:[#allocation2] sm:$0x30] }
 0x153   :  { %1804 = vrcp.f32 %v325_v53 }
 0x15d   :  { %v1805_v54 = vpop.eup %1804 }
 0x15e   :  { %v332_v58 = vmul.f32 0.0, %v1805_v54 }
 0x1c2   :  { %v335_v55 = vpop.permute.xlu0 %334 }
 0x1c3   :  { %v337_v56 = vmul.f32 %v1805_v54, %v335_v55 }
 0x1c5   :  { %339 = vrot.lane.b32.xlu0 %v337_v56, %s2049_s18 }
 0x237   :  { %v340_v59 = vpop.permute.xlu0 %339 }
 0x238   :  { %v342_v60 = vadd.f32 %v340_v59, %v332_v58 }
 0x23a   :  { %1806 = vtanh.f32 %v342_v60  ;;  %v459_v31 = vrot.slane %v342_v60, 6 }
 0x23b   :  { %1808 = vpow2.f32 %v1520_v62 }
 0x244   :  { %v1807_v61 = vpop.eup %1806 }
 0x245   :  { %345 = vrot.lane.b32.xlu1 %v1807_v61, %s2049_s18  ;;  %v1809_v4 = vpop.eup %1808 }
 0x246   :  { %v326_v6 = vadd.f32 1.0, %v1809_v4 }
 0x248   :  { %1810 = vrcp.f32 %v326_v6 }
 0x252   :  { %v1811_v7 = vpop.eup %1810 }
 0x2b7   :  { %v346_v8 = vpop.permute.xlu1 %345 }
 0x2b8   :  { %v2261_v9 = vmul.f32 %v1811_v7, %v346_v8 }
 0x2ba   :  { %1521 = vmatmul.mubr.msk.f32.vlgmr.msra.gmra.mrb[4].mxu0 %vm242_vm4, %v2261_v9 }
 0x2bb   :  { %1668 = vmatpush1.bf16.msra.mxu0 %v2204_v10  ;;  %690 = vmatprep.mubr.f32.mxu0 %v2047_v0 }
 0x2bc   :  { %1670 = vmatprep.subr.bf16.mxu0 %v2210_v17 }
 0x2bf   :  { %1672 = vmatpush1.bf16.msra.mxu0 %v2214_v22 }
 0x2c0   :  { %1674 = vmatprep.subr.bf16.mxu0 %v2216_v23 }
 0x2c3   :  { %1676 = vmatpush1.bf16.msra.mxu0 %v2222_v28 }
 0x2c4   :  { %1678 = vmatprep.subr.bf16.mxu0 %v2225_v29 }
 0x2c7   :  { %1680 = vmatpush1.bf16.msra.mxu0 %v2231_v32 }
 0x2c8   :  { %1698 = vmatprep.subr.bf16.mxu0 %v2202_v5 }
 0x38d   :  { %v432_v11 = vpop.f32.mrb[4].mxu0 }
 0x38e   :  { %v434_v12 = vpop.f32.mrb[5].mxu0  ;;  %v439_v18 = vrot.slane %v432_v11, 6 }
 0x38f   :  { %v440_v13 = vrot.slane %v434_v12, 6 }
 0x390   :  { %v443_v20 = vadd.f32 %v439_v18, %v361_v19 }
 0x391   :  { %v444_v15 = vadd.f32 %v440_v13, %v362_v14 }
 0x392   :  { %v1522_v21 = vmul.f32 -1.442695, %v443_v20  ;;  %v622_v20 = vld [vmem:[#allocation2] sm:$0xc0] }
 0x393   :  { %1812 = vtanh.f32 %v444_v15  ;;  %v1523_v38 = vmul.f32 -1.442695, %v444_v15  ;;  %v623_v15 = vld [vmem:[#allocation2 + $0x8] sm:$0xc0] }
 0x394   :  { %1814 = vpow2.f32 %v1522_v21 }
 0x39d   :  { %v1813_v16 = vpop.eup %1812 }
 0x39e   :  { %463 = vrot.lane.b32.xlu1 %v1813_v16, %s2049_s18  ;;  %v1815_v24 = vpop.eup %1814 }
 0x39f   :  { %v451_v25 = vadd.f32 1.0, %v1815_v24 }
 0x3a1   :  { %1816 = vrcp.f32 %v451_v25 }
 0x3ab   :  { %v1817_v26 = vpop.eup %1816 }
 0x3ac   :  { %v461_v34 = vmul.f32 %v1817_v26, %v459_v31 }
 0x410   :  { %v464_v27 = vpop.permute.xlu1 %463 }
 0x411   :  { %v466_v30 = vmul.f32 %v1817_v26, %v464_v27 }
 0x413   :  { %468 = vrot.lane.b32.xlu0 %v466_v30, %s2049_s18 }
 0x485   :  { %v469_v35 = vpop.permute.xlu0 %468 }
 0x486   :  { %v471_v36 = vadd.f32 %v469_v35, %v461_v34 }
 0x488   :  { %1818 = vtanh.f32 %v471_v36  ;;  %v589_v60 = vrot.slane %v471_v36, 6 }
 0x489   :  { %1820 = vpow2.f32 %v1523_v38 }
 0x492   :  { %v1819_v37 = vpop.eup %1818 }
 0x493   :  { %474 = vrot.lane.b32.xlu1 %v1819_v37, %s2049_s18  ;;  %v1821_v39 = vpop.eup %1820 }
 0x494   :  { %v452_v40 = vadd.f32 1.0, %v1821_v39 }
 0x496   :  { %1822 = vrcp.f32 %v452_v40 }
 0x4a0   :  { %v1823_v41 = vpop.eup %1822 }
 0x505   :  { %v475_v42 = vpop.permute.xlu1 %474 }
 0x506   :  { %v2277_v43 = vmul.f32 %v1823_v41, %v475_v42 }
 0x508   :  { %v488_v44 = vrot.slane %v2277_v43, 2 }
 0x50a   :  { %1524 = vmatmul.mubr.msk.f32.vlgmr.msra.gmra.mrb[2].mxu1 %vm242_vm4, %v488_v44 }
 0x50b   :  { %1684 = vmatpush1.bf16.msra.mxu1 %v2204_v10  ;;  %820 = vmatprep.mubr.f32.mxu1 %v2047_v0 }
 0x50c   :  { %1686 = vmatprep.subr.bf16.mxu1 %v2210_v17 }
 0x50f   :  { %1688 = vmatpush1.bf16.msra.mxu1 %v2214_v22 }
 0x510   :  { %1690 = vmatprep.subr.bf16.mxu1 %v2216_v23 }
 0x513   :  { %1692 = vmatpush1.bf16.msra.mxu1 %v2222_v28 }
 0x514   :  { %1694 = vmatprep.subr.bf16.mxu1 %v2225_v29 }
 0x517   :  { %1696 = vmatpush1.bf16.msra.mxu1 %v2231_v32 }
 0x518   :  { %1714 = vmatprep.subr.bf16.mxu1 %v2202_v5 }
 0x5dd   :  { %v562_v45 = vpop.f32.mrb[2].mxu1 }
 0x5de   :  { %v564_v46 = vpop.f32.mrb[3].mxu1  ;;  %v569_v51 = vrot.slane %v562_v45, 4 }
 0x5df   :  { %v570_v47 = vrot.slane %v564_v46, 4 }
 0x5e0   :  { %v573_v53 = vadd.f32 %v569_v51, %v492_v52  ;;  %v752_v52 = vld [vmem:[#allocation2 + $0x10] sm:$0x3] }
 0x5e1   :  { %v574_v49 = vadd.f32 %v570_v47, %v493_v48  ;;  %v753_v48 = vld [vmem:[#allocation2 + $0x18] sm:$0x3] }
 0x5e2   :  { %v1525_v54 = vmul.f32 -1.442695, %v573_v53 }
 0x5e3   :  { %1824 = vtanh.f32 %v574_v49  ;;  %v1526_v2 = vmul.f32 -1.442695, %v574_v49 }
 0x5e4   :  { %1826 = vpow2.f32 %v1525_v54 }
 0x5ed   :  { %v1825_v50 = vpop.eup %1824 }
 0x5ee   :  { %593 = vrot.lane.b32.xlu0 %v1825_v50, %s2049_s18  ;;  %v1827_v55 = vpop.eup %1826 }
 0x5ef   :  { %v581_v56 = vadd.f32 1.0, %v1827_v55 }
 0x5f1   :  { %1828 = vrcp.f32 %v581_v56 }
 0x5fb   :  { %v1829_v57 = vpop.eup %1828 }
 0x5fc   :  { %v591_v61 = vmul.f32 %v1829_v57, %v589_v60 }
 0x660   :  { %v594_v58 = vpop.permute.xlu0 %593 }
 0x661   :  { %v596_v59 = vmul.f32 %v1829_v57, %v594_v58 }
 0x663   :  { %598 = vrot.lane.b32.xlu1 %v596_v59, %s2049_s18 }
 0x6d5   :  { %v599_v62 = vpop.permute.xlu1 %598 }
 0x6d6   :  { %v601_v63 = vadd.f32 %v599_v62, %v591_v61 }
 0x6d8   :  { %1830 = vtanh.f32 %v601_v63  ;;  %v719_v31 = vrot.slane %v601_v63, 6 }
 0x6d9   :  { %1832 = vpow2.f32 %v1526_v2 }
 0x6e2   :  { %v1831_v1 = vpop.eup %1830 }
 0x6e3   :  { %604 = vrot.lane.b32.xlu0 %v1831_v1, %s2049_s18  ;;  %v1833_v3 = vpop.eup %1832 }
 0x6e4   :  { %v582_v4 = vadd.f32 1.0, %v1833_v3 }
 0x6e6   :  { %1834 = vrcp.f32 %v582_v4 }
 0x6f0   :  { %v1835_v6 = vpop.eup %1834 }
 0x755   :  { %v605_v7 = vpop.permute.xlu0 %604 }
 0x756   :  { %v2295_v8 = vmul.f32 %v1835_v6, %v605_v7 }
 0x758   :  { %v618_v11 = vrot.slane %v2295_v8, 4 }
 0x75a   :  { %1527 = vmatmul.mubr.msk.f32.vlgmr.msra.gmra.mrb[6].mxu0 %vm242_vm4, %v618_v11 }
 0x75b   :  { %1700 = vmatpush1.bf16.msra.mxu0 %v2204_v10  ;;  %934 = vmatprep.mubr.f32.mxu0 %v2047_v0 }
 0x75c   :  { %1702 = vmatprep.subr.bf16.mxu0 %v2210_v17 }
 0x75f   :  { %1704 = vmatpush1.bf16.msra.mxu0 %v2214_v22 }
 0x760   :  { %1706 = vmatprep.subr.bf16.mxu0 %v2216_v23 }
 0x763   :  { %1708 = vmatpush1.bf16.msra.mxu0 %v2222_v28 }
 0x764   :  { %1710 = vmatprep.subr.bf16.mxu0 %v2225_v29 }
 0x767   :  { %1712 = vmatpush1.bf16.msra.mxu0 %v2231_v32 }
 0x768   :  { %1730 = vmatprep.subr.bf16.mxu0 %v2202_v5 }
 0x82d   :  { %v692_v12 = vpop.f32.mrb[6].mxu0 }
 0x82e   :  { %v694_v13 = vpop.f32.mrb[7].mxu0  ;;  %v699_v19 = vrot.slane %v692_v12, 2 }
 0x82f   :  { %v700_v14 = vrot.slane %v694_v13, 2 }
 0x830   :  { %v703_v21 = vadd.f32 %v699_v19, %v622_v20  ;;  %v865_v19 = vld [vmem:[#allocation2 + $0x10] sm:$0xc] }
 0x831   :  { %v704_v16 = vadd.f32 %v700_v14, %v623_v15 }
 0x832   :  { %v1528_v24 = vmul.f32 -1.442695, %v703_v21 }
 0x833   :  { %1836 = vtanh.f32 %v704_v16  ;;  %v1529_v38 = vmul.f32 -1.442695, %v704_v16  ;;  %v866_v16 = vld [vmem:[#allocation2 + $0x18] sm:$0xc] }
 0x834   :  { %1838 = vpow2.f32 %v1528_v24 }
 0x83d   :  { %v1837_v18 = vpop.eup %1836 }
 0x83e   :  { %723 = vrot.lane.b32.xlu1 %v1837_v18, %s2049_s18  ;;  %v1839_v25 = vpop.eup %1838 }
 0x83f   :  { %v711_v26 = vadd.f32 1.0, %v1839_v25 }
 0x841   :  { %1840 = vrcp.f32 %v711_v26 }
 0x84b   :  { %v1841_v27 = vpop.eup %1840 }
 0x84c   :  { %v721_v34 = vmul.f32 %v1841_v27, %v719_v31 }
 0x8b0   :  { %v724_v30 = vpop.permute.xlu1 %723 }
 0x8b1   :  { %v726_v5 = vmul.f32 %v1841_v27, %v724_v30 }
 0x8b3   :  { %728 = vrot.lane.b32.xlu0 %v726_v5, %s2049_s18 }
 0x925   :  { %v729_v35 = vpop.permute.xlu0 %728 }
 0x926   :  { %v731_v36 = vadd.f32 %v729_v35, %v721_v34 }
 0x928   :  { %1842 = vtanh.f32 %v731_v36  ;;  %v843_v60 = vrot.slane %v731_v36, 6 }
 0x929   :  { %1844 = vpow2.f32 %v1529_v38 }
 0x932   :  { %v1843_v37 = vpop.eup %1842 }
 0x933   :  { %734 = vrot.lane.b32.xlu1 %v1843_v37, %s2049_s18  ;;  %v1845_v39 = vpop.eup %1844 }
 0x934   :  { %v712_v40 = vadd.f32 1.0, %v1845_v39 }
 0x936   :  { %1846 = vrcp.f32 %v712_v40 }
 0x940   :  { %v1847_v41 = vpop.eup %1846 }
 0x9a5   :  { %v735_v42 = vpop.permute.xlu1 %734 }
 0x9a6   :  { %v2313_v45 = vmul.f32 %v1847_v41, %v735_v42  ;;  %v989_v42 = vld [vmem:[#allocation2 + $0x18] sm:$0x30] }
 0x9a8   :  { %v748_v46 = vrot.slane %v2313_v45, 6 }
 0x9aa   :  { %1530 = vmatmul.mubr.msk.f32.vlgmr.msra.gmra.mrb[4].mxu1 %vm242_vm4, %v748_v46 }
 0x9ab   :  { %1716 = vmatpush1.bf16.msra.mxu1 %v2204_v10  ;;  %1056 = vmatprep.mubr.f32.mxu1 %v2047_v0 }
 0x9ac   :  { %1718 = vmatprep.subr.bf16.mxu1 %v2210_v17 }
 0x9af   :  { %1720 = vmatpush1.bf16.msra.mxu1 %v2214_v22 }
 0x9b0   :  { %1722 = vmatprep.subr.bf16.mxu1 %v2216_v23 }
 0x9b3   :  { %1724 = vmatpush1.bf16.msra.mxu1 %v2222_v28 }
 0x9b4   :  { %1726 = vmatprep.subr.bf16.mxu1 %v2225_v29 }
 0x9b7   :  { %1728 = vmatpush1.bf16.msra.mxu1 %v2231_v32 }
 0x9b8   :  { %1568 = vmatprep.subr.mxu1 %v2047_v0 }
 0xa7d   :  { %v822_v47 = vpop.f32.mrb[4].mxu1 }
 0xa7e   :  { %v824_v49 = vpop.f32.mrb[5].mxu1  ;;  %v827_v53 = vadd.f32 %v822_v47, %v752_v52 }
 0xa7f   :  { %v828_v50 = vadd.f32 %v824_v49, %v753_v48 }
 0xa80   :  { %v1531_v54 = vmul.f32 -1.442695, %v827_v53 }
 0xa81   :  { %1848 = vtanh.f32 %v828_v50  ;;  %v1532_v2 = vmul.f32 -1.442695, %v828_v50  ;;  %v988_v50 = vld [vmem:[#allocation2 + $0x10] sm:$0x30] }
 0xa82   :  { %1850 = vpow2.f32 %v1531_v54 }
 0xa8b   :  { %v1849_v51 = vpop.eup %1848 }
 0xa8c   :  { %847 = vrot.lane.b32.xlu0 %v1849_v51, %s2049_s18  ;;  %v1851_v55 = vpop.eup %1850 }
 0xa8d   :  { %v835_v56 = vadd.f32 1.0, %v1851_v55 }
 0xa8f   :  { %1852 = vrcp.f32 %v835_v56 }
 0xa99   :  { %v1853_v57 = vpop.eup %1852 }
 0xa9a   :  { %v845_v61 = vmul.f32 %v1853_v57, %v843_v60 }
 0xafe   :  { %v848_v58 = vpop.permute.xlu0 %847 }
 0xaff   :  { %v850_v59 = vmul.f32 %v1853_v57, %v848_v58 }
 0xb01   :  { %852 = vrot.lane.b32.xlu1 %v850_v59, %s2049_s18 }
 0xb73   :  { %v853_v62 = vpop.permute.xlu1 %852 }
 0xb74   :  { %v855_v63 = vadd.f32 %v853_v62, %v845_v61 }
 0xb76   :  { %1854 = vtanh.f32 %v855_v63  ;;  %v963_v24 = vrot.slane %v855_v63, 6 }
 0xb77   :  { %1856 = vpow2.f32 %v1532_v2 }
 0xb80   :  { %v1855_v1 = vpop.eup %1854 }
 0xb81   :  { %858 = vrot.lane.b32.xlu0 %v1855_v1, %s2049_s18  ;;  %v1857_v3 = vpop.eup %1856 }
 0xb82   :  { %v836_v4 = vadd.f32 1.0, %v1857_v3 }
 0xb84   :  { %1858 = vrcp.f32 %v836_v4 }
 0xb8e   :  { %v1859_v6 = vpop.eup %1858 }
 0xbf3   :  { %v859_v7 = vpop.permute.xlu0 %858 }
 0xbf4   :  { %v2331_v12 = vmul.f32 %v1859_v6, %v859_v7 }
 0xbf6   :  { %1533 = vmatmul.mubr.msk.f32.vlgmr.msra.gmra.mrb[8].mxu0 %vm242_vm4, %v2331_v12 }
 0xbf7   :  { %1732 = vmatpush1.bf16.msra.mxu0 %v2204_v10  ;;  %1178 = vmatprep.mubr.f32.mxu0 %v2047_v0 }
 0xbf8   :  { %1734 = vmatprep.subr.bf16.mxu0 %v2210_v17 }
 0xbfb   :  { %1736 = vmatpush1.bf16.msra.mxu0 %v2214_v22 }
 0xbfc   :  { %1738 = vmatprep.subr.bf16.mxu0 %v2216_v23 }
 0xbff   :  { %1740 = vmatpush1.bf16.msra.mxu0 %v2222_v28 }
 0xc00   :  { %1742 = vmatprep.subr.bf16.mxu0 %v2225_v29 }
 0xc03   :  { %1744 = vmatpush1.bf16.msra.mxu0 %v2231_v32 }
 0xcc9   :  { %v936_v13 = vpop.f32.mrb[8].mxu0 }
 0xcca   :  { %v938_v14 = vpop.f32.mrb[9].mxu0  ;;  %v943_v17 = vrot.slane %v936_v13, 6 }
 0xccb   :  { %v944_v15 = vrot.slane %v938_v14, 6 }
 0xccc   :  { %v947_v22 = vadd.f32 %v943_v17, %v865_v19  ;;  %v2051_v19 = vmov 5  }
 0xccd   :  { %v948_v18 = vadd.f32 %v944_v15, %v866_v16  ;;  %v1111_v16 = vld [vmem:[#allocation2 + $0x18] sm:$0xc0]  ;;  %1797 = vset.pattern.permute.xlu1 %v2051_v19 }
 0xcce   :  { %v1534_v20 = vmul.f32 -1.442695, %v947_v22  ;;  %v220_v22 = vld [vmem:[%s2434_s1] sm:$0x3] }
 0xccf   :  { %1860 = vtanh.f32 %v948_v18  ;;  %v1535_v5 = vmul.f32 -1.442695, %v948_v18 }
 0xcd0   :  { %1862 = vpow2.f32 %v1534_v20  ;;  %v1233_v20 = vsel %vm1232_vm5, %v220_v22, 0.0 }
 0xcd9   :  { %v1861_v10 = vpop.eup %1860 }
 0xcda   :  { %967 = vrot.lane.b32.xlu1 %v1861_v10, %s2049_s18  ;;  %v1863_v23 = vpop.eup %1862  ;;  %v2050_v10 = vmov 0  }
 0xcdb   :  { %v955_v28 = vadd.f32 1.0, %v1863_v23  ;;  %1792 = vset.pattern.permute.xlu0 %v2050_v10 }
 0xcdd   :  { %1864 = vrcp.f32 %v955_v28  ;;  %v1110_v28 = vld [vmem:[#allocation2 + $0x10] sm:$0xc0] }
 0xce7   :  { %v1865_v29 = vpop.eup %1864 }
 0xce8   :  { %v965_v25 = vmul.f32 %v1865_v29, %v963_v24 }
 0xd4c   :  { %v968_v21 = vpop.permute.xlu1 %967 }
 0xd4d   :  { %v970_v32 = vmul.f32 %v1865_v29, %v968_v21 }
 0xd4f   :  { %972 = vrot.lane.b32.xlu0 %v970_v32, %s2049_s18 }
 0xdc1   :  { %v973_v26 = vpop.permute.xlu0 %972 }
 0xdc2   :  { %v975_v27 = vadd.f32 %v973_v26, %v965_v25 }
 0xdc4   :  { %1866 = vtanh.f32 %v975_v27  ;;  %v1085_v58 = vrot.slane %v975_v27, 6 }
 0xdc5   :  { %1868 = vpow2.f32 %v1535_v5  ;;  %v2053_v5 = vmov 1  }
 0xdce   :  { %v1867_v30 = vpop.eup %1866 }
 0xdcf   :  { %978 = vrot.lane.b32.xlu1 %v1867_v30, %s2049_s18  ;;  %v1869_v31 = vpop.eup %1868  ;;  %v2052_v30 = vmov 7  }
 0xdd0   :  { %v956_v34 = vadd.f32 1.0, %v1869_v31  ;;  %v2054_v31 = vmov 6  }
 0xdd2   :  { %1870 = vrcp.f32 %v956_v34  ;;  %v2055_v34 = vmov 2  }
 0xddc   :  { %v1871_v35 = vpop.eup %1870 }
 0xe41   :  { %v979_v36 = vpop.permute.xlu1 %978 }
 0xe42   :  { %v2346_v37 = vmul.f32 %v1871_v35, %v979_v36  ;;  %v2056_v35 = vmov 3   ;;  %v2057_v36 = vmov 4  }
 0xe44   :  { %v984_v38 = vrot.slane %v2346_v37, 2  ;;  %v1413_v37 = vld [vmem:[#allocation11 + $0x20] sm:$0xff] }
 0xe46   :  { %1536 = vmatmul.mubr.msk.f32.vlgmr.msra.gmra.mrb[6].mxu1 %vm242_vm4, %v984_v38 }
 0xe47   :  { %1570 = vmatprep.mubr.msk.f32.mxu1 %vm2059_vm8, %v2047_v0 }
 0xf19   :  { %v1058_v39 = vpop.f32.mrb[6].mxu1 }
 0xf1a   :  { %v1060_v40 = vpop.f32.mrb[7].mxu1  ;;  %v1065_v49 = vrot.slane %v1058_v39, 4  ;;  %v1239_v39 = vld [vmem:[#allocation9] sm:$0xff] }
 0xf1b   :  { %v1066_v41 = vrot.slane %v1060_v40, 4  ;;  %v1240_v40 = vld [vmem:[#allocation9 + $0x8] sm:$0xff] }
 0xf1c   :  { %v1069_v51 = vadd.f32 %v1065_v49, %v988_v50 }
 0xf1d   :  { %v1070_v47 = vadd.f32 %v1066_v41, %v989_v42  ;;  %v1241_v41 = vld [vmem:[#allocation9 + $0x10] sm:$0xff]  ;;  %v2058_v42 = vmov 0.0|0.0  }
 0xf1e   :  { %v1537_v52 = vmul.f32 -1.442695, %v1069_v51  ;;  %1745 = vmatprep.subr.bf16.mxu0 %v2058_v42 }
 0xf1f   :  { %1872 = vtanh.f32 %v1070_v47  ;;  %v1538_v63 = vmul.f32 -1.442695, %v1070_v47  ;;  %v1746_v47 = vpack.c.bf16 %v1240_v40, %v1239_v39 }
 0xf20   :  { %1874 = vpow2.f32 %v1537_v52 }
 0xf29   :  { %v1873_v48 = vpop.eup %1872 }
 0xf2a   :  { %1089 = vrot.lane.b32.xlu0 %v1873_v48, %s2049_s18  ;;  %v1875_v53 = vpop.eup %1874  ;;  %v1242_v48 = vld [vmem:[#allocation9 + $0x18] sm:$0xff] }
 0xf2b   :  { %v1077_v54 = vadd.f32 1.0, %v1875_v53  ;;  %v1749_v49 = vpack.c.bf16 %v1242_v48, %v1241_v41 }
 0xf2d   :  { %1876 = vrcp.f32 %v1077_v54  ;;  %v1243_v54 = vld [vmem:[#allocation9 + $0x20] sm:$0xff] }
 0xf37   :  { %v1877_v55 = vpop.eup %1876 }
 0xf38   :  { %v1087_v59 = vmul.f32 %v1877_v55, %v1085_v58  ;;  %v1246_v58 = vld [vmem:[#allocation9 + $0x38] sm:$0xff] }
 0xf9c   :  { %v1090_v56 = vpop.permute.xlu0 %1089 }
 0xf9d   :  { %v1092_v57 = vmul.f32 %v1877_v55, %v1090_v56  ;;  %v1244_v55 = vld [vmem:[#allocation9 + $0x28] sm:$0xff] }
 0xf9e   :  { %v1752_v56 = vpack.c.bf16 %v1244_v55, %v1243_v54 }
 0xf9f   :  { %1094 = vrot.lane.b32.xlu1 %v1092_v57, %s2049_s18  ;;  %v1245_v57 = vld [vmem:[#allocation9 + $0x30] sm:$0xff] }
0x1011   :  { %v1095_v60 = vpop.permute.xlu1 %1094 }
0x1012   :  { %v2354_v61 = vadd.f32 %v1095_v60, %v1087_v59  ;;  %v1755_v59 = vpack.c.bf16 %v1246_v58, %v1245_v57  ;;  %v1248_v60 = vld [vmem:[%s2440_s7] sm:$0x7f] }
0x1013   :  { %1569 = vmatpush3.msk.msra.mxu1 %vm1253_vm6, %v1248_v60  ;;  %v1545_v58 = vld [vmem:[%s2441_s8] ss:$0 sm:$0xff] }
0x1014   :  { %1878 = vtanh.f32 %v2354_v61  ;;  %v1207_v50 = vrot.slane %v2354_v61, 6  ;;  %v1247_v61 = vld [vmem:[%s2435_s2] sm:$0x3]  ;;  %1757 = vmatprep.subr.bf16.mxu1 %v2058_v42 }
0x1015   :  { %1880 = vpow2.f32 %v1538_v63  ;;  %v1410_v63 = vld [vmem:[#allocation11 + $0x8] sm:$0xff]  ;;  %1571 = vmatmul.mubr.msk.f32.vlgmr.msra.gmra.mrb[8].mxu1 %vm1249_vm7, %v1247_v61 }
0x1016   :  { %1608 = vmatprep.mubr.msk.f32.mxu1 %vm2059_vm8, %v2047_v0 }
0x101e   :  { %v1879_v62 = vpop.eup %1878 }
0x101f   :  { %1100 = vrot.lane.b32.xlu0 %v1879_v62, %s2049_s18  ;;  %v1881_v1 = vpop.eup %1880  ;;  %v1409_v62 = vld [vmem:[#allocation11] sm:$0xff] }
0x1020   :  { %v1078_v2 = vadd.f32 1.0, %v1881_v1  ;;  %v1411_v1 = vld [vmem:[#allocation11 + $0x10] sm:$0xff] }
0x1022   :  { %1882 = vrcp.f32 %v1078_v2  ;;  %v1758_v2 = vpack.c.bf16 %v1410_v63, %v1409_v62  ;;  %v1546_v63 = vld [vmem:[%s2443_s10] ss:$0 sm:$0xff] }
0x1024   :  { %1759 = vmatpush3.bf16.msra.mxu1 %v1758_v2 }
0x1025   :  { %1760 = vmatprep.subr.bf16.mxu1 %v2058_v42 }
0x102c   :  { %v1883_v3 = vpop.eup %1882 }
0x1091   :  { %v1101_v4 = vpop.permute.xlu0 %1100 }
0x1092   :  { %v2358_v6 = vmul.f32 %v1883_v3, %v1101_v4  ;;  %v1412_v3 = vld [vmem:[#allocation11 + $0x18] sm:$0xff] }
0x1094   :  { %v1106_v7 = vrot.slane %v2358_v6, 4  ;;  %v1415_v6 = vld [vmem:[#allocation11 + $0x30] sm:$0xff] }
0x1096   :  { %1539 = vmatmul.mubr.msk.f32.vlgmr.msra.gmra.mrb[10].mxu0 %vm242_vm4, %v1106_v7 }
0x1097   :  { %1747 = vmatpush3.bf16.msra.mxu0 %v1746_v47  ;;  %1589 = vmatprep.mubr.msk.f32.mxu0 %vm2059_vm8, %v2047_v0  ;;  %v238_v0 = vand.u32 127, %v115_v33 }
0x1098   :  { %1748 = vmatprep.subr.bf16.mxu0 %v2058_v42 }
0x1099   :  { %vm239_vm9 = vcmp.lt.s32.totalorder %v238_v0, 32 }
0x109b   :  { %1750 = vmatpush3.bf16.msra.mxu0 %v1749_v49 }
0x109c   :  { %1751 = vmatprep.subr.bf16.mxu0 %v2058_v42 }
0x109f   :  { %1753 = vmatpush3.bf16.msra.mxu0 %v1752_v56 }
0x10a0   :  { %1754 = vmatprep.subr.bf16.mxu0 %v2058_v42 }
0x10a3   :  { %1756 = vmatpush3.bf16.msra.mxu0 %v1755_v59 }
0x10e8   :  { %v1323_v54 = vpop.f32.mrb[8].mxu1 }
0x10e9   :  { %v1572_v55 = vpop.f32.mrb[9].mxu1 }
0x1169   :  { %v1180_v13 = vpop.f32.mrb[10].mxu0 }
0x116a   :  { %v1182_v14 = vpop.f32.mrb[11].mxu0  ;;  %v1187_v23 = vrot.slane %v1180_v13, 2  ;;  %v1761_v13 = vpack.c.bf16 %v1412_v3, %v1411_v1 }
0x116b   :  { %v1188_v15 = vrot.slane %v1182_v14, 2 }
0x116c   :  { %v1191_v29 = vadd.f32 %v1187_v23, %v1110_v28  ;;  %1762 = vmatpush3.bf16.msra.mxu1 %v1761_v13 }
0x116d   :  { %v2364_v18 = vadd.f32 %v1188_v15, %v1111_v16  ;;  %1763 = vmatprep.subr.bf16.mxu1 %v2058_v42 }
0x116e   :  { %v1540_v21 = vmul.f32 -1.442695, %v1191_v29 }
0x116f   :  { %1884 = vtanh.f32 %v2364_v18 }
0x1170   :  { %1886 = vpow2.f32 %v1540_v21 }
0x1179   :  { %v1885_v17 = vpop.eup %1884 }
0x117a   :  { %1211 = vrot.lane.b32.xlu1 %v1885_v17, %s2049_s18  ;;  %v1887_v32 = vpop.eup %1886  ;;  %v1541_v17 = vmul.f32 -1.442695, %v2364_v18 }
0x117b   :  { %v1199_v24 = vadd.f32 1.0, %v1887_v32 }
0x117d   :  { %1888 = vrcp.f32 %v1199_v24 }
0x1187   :  { %v1889_v25 = vpop.eup %1888 }
0x1188   :  { %v1209_v51 = vmul.f32 %v1889_v25, %v1207_v50 }
0x119e   :  { %1234 = vadd.xlane.f32.xlu1 %v1233_v20 }
0x11af   :  { %613 = vperm.xlu1 %1797, %v220_v22  }
0x11ec   :  { %v1212_v26 = vpop.permute.xlu1 %1211 }
0x11ed   :  { %v1214_v27 = vmul.f32 %v1889_v25, %v1212_v26 }
0x11ef   :  { %1216 = vrot.lane.b32.xlu0 %v1214_v27, %s2049_s18 }
0x11f3   :  { %351 = vperm.xlu0 %1792, %v220_v22  }
0x11f7   :  { %1793 = vset.pattern.permute.xlu0 %v2052_v30 }
0x11f8   :  { %355 = vperm.xlu0 %1793, %v220_v22  }
0x11fc   :  { %1794 = vset.pattern.permute.xlu0 %v2053_v5 }
0x11fd   :  { %479 = vperm.xlu0 %1794, %v220_v22  }
0x1201   :  { %1795 = vset.pattern.permute.xlu0 %v2054_v31 }
0x1202   :  { %483 = vperm.xlu0 %1795, %v220_v22  }
0x1206   :  { %1796 = vset.pattern.permute.xlu0 %v2055_v34 }
0x1207   :  { %609 = vperm.xlu0 %1796, %v220_v22  }
0x120b   :  { %1798 = vset.pattern.permute.xlu0 %v2056_v35 }
0x120c   :  { %739 = vperm.xlu0 %1798, %v220_v22  }
0x1210   :  { %1799 = vset.pattern.permute.xlu0 %v2057_v36 }
0x1211   :  { %743 = vperm.xlu0 %1799, %v220_v22  }
0x122b   :  { %v1235_v22 = vpop.xlane.xlu1 %1234 }
0x122c   :  { %v1236_v36 = vmax.f32 %v1235_v22, 1e-06 }
0x122f   :  { %v614_v23 = vpop.permute.xlu1 %613 }
0x1261   :  { %v1217_v52 = vpop.permute.xlu0 %1216 }
0x1262   :  { %v1219_v53 = vadd.f32 %v1217_v52, %v1209_v51 }
0x1264   :  { %1890 = vtanh.f32 %v1219_v53 }
0x1265   :  { %1892 = vpow2.f32 %v1541_v17 }
0x126e   :  { %v1891_v4 = vpop.eup %1890 }
0x126f   :  { %1222 = vrot.lane.b32.xlu1 %v1891_v4, %s2049_s18  ;;  %v1893_v29 = vpop.eup %1892 }
0x1270   :  { %v1200_v18 = vadd.f32 1.0, %v1893_v29 }
0x1272   :  { %v352_v14 = vpop.permute.xlu0 %351  ;;  %1894 = vrcp.f32 %v1200_v18 }
0x1273   :  { %1896 = vrcp.f32 %v1236_v36 }
0x1277   :  { %v356_v15 = vpop.permute.xlu0 %355 }
0x1278   :  { %v358_v32 = vsel %vm239_vm9, %v352_v14, %v356_v15  ;;  %v1226_v48 = vsel %vm239_vm9, %v356_v15, %v352_v14 }
0x1279   :  { %v359_v27 = vmul.f32 %v358_v32, %v2261_v9 }
0x127c   :  { %v480_v16 = vpop.permute.xlu0 %479  ;;  %v1895_v8 = vpop.eup %1894 }
0x127d   :  { %v1897_v51 = vpop.eup %1896 }
0x1281   :  { %v484_v10 = vpop.permute.xlu0 %483 }
0x1282   :  { %v486_v28 = vsel %vm239_vm9, %v480_v16, %v484_v10 }
0x1283   :  { %v490_v25 = vmul.f32 %v488_v44, %v486_v28 }
0x1285   :  { %v491_v30 = vadd.f32 %v490_v25, %v359_v27 }
0x1286   :  { %v610_v19 = vpop.permute.xlu0 %609 }
0x1287   :  { %v616_v24 = vsel %vm239_vm9, %v610_v19, %v614_v23  ;;  %v982_v44 = vsel %vm239_vm9, %v614_v23, %v610_v19 }
0x1288   :  { %v620_v33 = vmul.f32 %v618_v11, %v616_v24  ;;  %v986_v9 = vmul.f32 %v984_v38, %v982_v44  ;;  %v1104_v11 = vsel %vm239_vm9, %v484_v10, %v480_v16  ;;  %v1414_v38 = vld [vmem:[#allocation11 + $0x28] sm:$0xff] }
0x1289   :  { %v1108_v41 = vmul.f32 %v1106_v7, %v1104_v11  ;;  %v1764_v53 = vpack.c.bf16 %v1414_v38, %v1413_v37  ;;  %v1416_v7 = vld [vmem:[#allocation11 + $0x38] sm:$0xff] }
0x128a   :  { %v621_v31 = vadd.f32 %v620_v33, %v491_v30  ;;  %v1767_v56 = vpack.c.bf16 %v1416_v7, %v1415_v6 }
0x128b   :  { %v740_v20 = vpop.permute.xlu0 %739  ;;  %1765 = vmatpush3.bf16.msra.mxu1 %v1764_v53 }
0x128c   :  { %1766 = vmatprep.subr.bf16.mxu1 %v2058_v42 }
0x128f   :  { %1768 = vmatpush3.bf16.msra.mxu1 %v1767_v56 }
0x1290   :  { %v744_v21 = vpop.permute.xlu0 %743 }
0x1291   :  { %v746_v26 = vsel %vm239_vm9, %v740_v20, %v744_v21  ;;  %v862_v34 = vsel %vm239_vm9, %v744_v21, %v740_v20 }
0x1292   :  { %v750_v5 = vmul.f32 %v748_v46, %v746_v26  ;;  %v863_v43 = vmul.f32 %v862_v34, %v2331_v12 }
0x1294   :  { %v751_v35 = vadd.f32 %v750_v5, %v621_v31 }
0x1296   :  { %v864_v39 = vadd.f32 %v863_v43, %v751_v35 }
0x1298   :  { %v987_v46 = vadd.f32 %v986_v9, %v864_v39 }
0x129a   :  { %v1109_v12 = vadd.f32 %v1108_v41, %v987_v46 }
0x12e1   :  { %v1223_v45 = vpop.permute.xlu1 %1222 }
0x12e2   :  { %v1225_v40 = vmul.f32 %v1895_v8, %v1223_v45 }
0x12e4   :  { %v1228_v47 = vrot.slane %v1225_v40, 6 }
0x12e6   :  { %v1230_v49 = vmul.f32 %v1228_v47, %v1226_v48 }
0x12e8   :  { %v1231_v50 = vadd.f32 %v1230_v49, %v1109_v12 }
0x12ea   :  { %v1238_v52 = vmul.f32 %v1897_v51, %v1231_v50 }
0x12ec   :  { %1590 = vmatmul.mubr.msk.f32.vlgmr.msra.gmra.mrb[12].mxu0 %vm242_vm4, %v1238_v52 }
0x13bf   :  { %v1396_v57 = vpop.f32.mrb[12].mxu0 }
0x13c0   :  { %v1397_v59 = vadd.f32 %v1396_v57, %v1323_v54  ;;  %v1591_v60 = vpop.f32.mrb[13].mxu0 }
0x13c2   :  { %v1407_v61 = vadd.f32 %v1545_v58, %v1397_v59 }
0x13c4   :  { %v1408_v62 = vmax.f32 %v1407_v61, 0.0 }
0x13c6   :  { %1609 = vmatmul.mubr.msk.f32.vlgmr.msra.gmra.mrb[10].mxu1 %vm242_vm4, %v1408_v62 }
0x1499   :  { %v1493_v42 = vpop.f32.mrb[10].mxu1 }
0x149a   :  { %v1494_v1 = vadd.f32 %v1546_v63, %v1493_v42  ;;  %v1610_v2 = vpop.f32.mrb[11].mxu1 }
0x149c   :  { %1497 = vst [vmem:[#allocation12] sm:$0x3] %v1494_v1 }
0x149d   :  { %2019 = shalt.err (!%p2016_p2)
}
0x149e   :  { %s2020_s17 = scalar_lea.hbm %s2444_s11, 32 }
0x149f   :  { %p2021_p3 = scmp.ne.s32.totalorder %s2444_s11, %s2020_s17  ;;  %p2024_p4 = scmp.lt.u32.totalorder %s2020_s17, %s2444_s11 }
0x14a1   :  { %p2026_p5 = pnand %p2024_p4, %p2021_p3 }
0x14a3   :  { %2029 = shalt.err (!%p2026_p5)
}
0x14a4   :  { %1507 = dma.vmem_to_hbm [thread:$0]  %s1505_s16, 32, %s2444_s11, [#allocation5]  }
0x14a5   :  { %2036 = dma.done.wait [#allocation5], 32  }
0x14a6   :  { %2037 = vsyncadd [#allocation5], 4294967264 }
0x14a7   :  { %1511 = vsyncpa [#allocation4], 1 }
0x14a8   :  { %1512 = vsyncpa [#allocation7], 1 }
0x14a9   :  { %1513 = vsyncpa [#allocation10], 1 }
0x14aa   :  { %1514 = vsyncpa [#allocation5], 1 }

</bundles_post_ra>
